<compile_context>
chip_gen: v7x
topology: tpu7x:2x2x1
jax: 0.10.0
libtpu: 0.0.40
codegen_flags: <defaults>
</compile_context>

<pallas_src>
import math

import jax
import jax.numpy as jnp
from jax import lax
from jax.experimental import pallas as pl
from jax.experimental.pallas import tpu as pltpu

POS_DIM = 3
M_DIM = 64                    # EGNN_Sparse m_dim used by EGNNNetwork
COORS_HID = 4 * M_DIM         # coors_mlp hidden width (256)
HIDDEN_SIZE = 128             # graph-MLP hidden size
LN_EPS = 1e-5                 # torch_geometric LayerNorm eps
OUT_PAD = 128                 # readout padded to a full lane group (dense stores)
EDGE_TILE = 512               # in-kernel edge chunk (bounds [tE, N] one-hot live set)
VMEM_LIMIT_BYTES = 32 * 1024 * 1024

# rows of the packed small-vector parameter slab, per layer:
#   0 b_e1, 1 b_e2, 2 b_c1, 3 w_c2(row), 4 b_c2, 5 gamma, 6 beta, 7 b_n1, 8 b_n2
_VEC_ROWS_PER_LAYER = 9
# two extra global rows: [2*9] = b_g1, [2*9+1] = b_g2 (padded to OUT_PAD)


def _silu(v):
    # SiLU(x) = x * sigmoid(x); exp + approx reciprocal both run on the EUP slot.
    return v * pl.reciprocal(1.0 + jnp.exp(-v), approx=True)


def _full_mean(v):
    """Mean over all elements of a 2-D value as a [1, 1] array (constant multiply, no divide)."""
    s = jnp.sum(v, axis=1, keepdims=True)
    s = jnp.sum(s, axis=0, keepdims=True)
    return s * (1.0 / float(v.shape[0] * v.shape[1]))


def _onehot_bf16(cond):
    # bool -> f32 -> bf16: bf16 one-hots run the gather/scatter matmuls as native bf16
    # MXU passes and halve the one-hot VMEM footprint; values are exactly 0/1.
    return cond.astype(jnp.float32).astype(jnp.bfloat16)


# ---------------------------------------------------------------------------
# Single fused kernel: EGNN layer 1 -> EGNN layer 2 -> graph readout MLP
# ---------------------------------------------------------------------------
def egnn_fused_kernel(x_all_ref, ea_ref, edges_ref, batch_ref, x2_ref,
                      we1_ref, we2_ref, wc1_ref, wn1_ref, wn2_ref,
                      wg1_ref, wg2_ref, vec_ref, out_ref):
    state = x_all_ref[...]                      # [N, 3+F]  packed [coors | feats]
    ea = ea_ref[...]                            # [E, Fe]
    edges = edges_ref[...]                      # [E, 2]    col0 = src, col1 = dst
    N = state.shape[0]
    F = state.shape[1] - POS_DIM
    E = ea.shape[0]
    G = out_ref.shape[0]
    h_e = we1_ref.shape[2]
    m_dim = we2_ref.shape[2]
    c_hid = wc1_ref.shape[2]

    def vrow(idx, width):                       # static row of the packed parameter slab
        return vec_ref[idx:idx + 1, :width]     # [1, width]

    # graph one-hot for the readout scatter_mean (built once)
    graph_ids = lax.broadcasted_iota(jnp.int32, (G, N), 0)
    in_graph = graph_ids == batch_ref[...]
    oh_g = _onehot_bf16(in_graph)                                              # [G, N]
    counts = jnp.sum(in_graph.astype(jnp.float32), axis=1, keepdims=True)      # [G, 1]
    inv_counts = pl.reciprocal(jnp.maximum(counts, 1.0), approx=True)

    # ---- two EGNN_Sparse layers (statically unrolled; params layer-stacked) ----------
    for l in range(2):
        base = l * _VEC_ROWS_PER_LAYER
        b_e1 = vrow(base + 0, h_e)
        b_e2 = vrow(base + 1, m_dim)
        b_c1 = vrow(base + 2, c_hid)
        w_c2 = vrow(base + 3, c_hid)            # coors_mlp.3 weight as a [1, 256] row
        b_c2 = vrow(base + 4, 1)
        gamma = vrow(base + 5, F)
        beta = vrow(base + 6, F)
        b_n1 = vrow(base + 7, 2 * F)
        b_n2 = vrow(base + 8, F)
        w_e1 = we1_ref[l]                       # [d_in, h_e]   (pre-transposed)
        w_e2 = we2_ref[l]                       # [h_e, M]
        w_c1 = wc1_ref[l]                       # [M, 4M]
        w_n1 = wn1_ref[l]                       # [F+M, 2F]
        w_n2 = wn2_ref[l]                       # [2F, F]

        state_bf = state.astype(jnp.bfloat16)   # bf16 gather operand (MXU)

        # fused scatter accumulator: [coord delta | m_i] as one [N, 3+M] slab
        scat = jnp.zeros((N, POS_DIM + m_dim), jnp.float32)

        # edge-chunked message pass (bounds the [tE, N] one-hots / [tE, 256] hidden)
        for e0 in range(0, E, EDGE_TILE):
            te = min(EDGE_TILE, E - e0)
            ids = lax.broadcasted_iota(jnp.int32, (te, N), 1)
            oh_src = _onehot_bf16(ids == edges[e0:e0 + te, 0:1])               # [te, N]
            oh_dst = _onehot_bf16(ids == edges[e0:e0 + te, 1:2])               # [te, N]

            # packed gathers: one wide [coors|feats] slab per one-hot (no rel_coors matmul)
            x_j = jnp.dot(oh_src, state_bf, preferred_element_type=jnp.float32)  # [te, 3+F]
            x_i = jnp.dot(oh_dst, state_bf, preferred_element_type=jnp.float32)  # [te, 3+F]
            rel = x_j[:, :POS_DIM] - x_i[:, :POS_DIM]            # coors[src] - coors[dst]
            rel_dist = jnp.sum(rel * rel, axis=-1, keepdims=True)               # [te, 1]

            # edge_mlp( cat([x_i, x_j, edge_attr, rel_dist]) )
            edge_in = jnp.concatenate(
                [x_i[:, POS_DIM:], x_j[:, POS_DIM:], ea[e0:e0 + te], rel_dist], axis=-1)
            h = _silu(jnp.dot(edge_in, w_e1, preferred_element_type=jnp.float32) + b_e1)
            m_ij = _silu(jnp.dot(h, w_e2, preferred_element_type=jnp.float32) + b_e2)

            # coors_mlp: width-1 output as broadcast-multiply + lane reduce (no K=1 matmul)
            c = _silu(jnp.dot(m_ij, w_c1, preferred_element_type=jnp.float32) + b_c1)
            coor_w = jnp.sum(c * w_c2, axis=-1, keepdims=True) + b_c2           # [te, 1]

            # single fused scatter_add of [coor_w*rel | m_ij] onto target nodes (dst)
            payload = jnp.concatenate([coor_w * rel, m_ij], axis=-1)            # [te, 3+M]
            scat = scat + lax.dot_general(
                oh_dst, payload.astype(jnp.bfloat16), (((0,), (0,)), ((), ())),
                preferred_element_type=jnp.float32)                             # [N, 3+M]

        coors = state[:, :POS_DIM] + scat[:, :POS_DIM]
        m_i = scat[:, POS_DIM:]
        feats = state[:, POS_DIM:]

        # torch_geometric LayerNorm, graph mode with batch=None (see NOTE at top):
        # (x - mean_all) / (std_biased_all + eps) * gamma + beta
        mu = _full_mean(feats)
        cen = feats - mu
        std = jnp.sqrt(_full_mean(cen * cen))
        feats_n = cen * pl.reciprocal(std + LN_EPS, approx=True) * gamma + beta

        node_in = jnp.concatenate([feats_n, m_i], axis=-1)                      # [N, F+M]
        hid = _silu(jnp.dot(node_in, w_n1, preferred_element_type=jnp.float32) + b_n1)
        feats = feats + jnp.dot(hid, w_n2, preferred_element_type=jnp.float32) + b_n2

        state = jnp.concatenate([coors, feats], axis=-1)                        # next layer

    # ---- readout: scatter_mean over graphs ++ x2 -> Linear(128) -> ReLU -> Linear ----
    feats = state[:, POS_DIM:]
    means = jnp.dot(oh_g, feats.astype(jnp.bfloat16),
                    preferred_element_type=jnp.float32) * inv_counts            # [G, F]
    g_in = jnp.concatenate([means, x2_ref[...]], axis=-1)                       # [G, F+M1]
    b_g1 = vrow(2 * _VEC_ROWS_PER_LAYER + 0, wg1_ref.shape[1])
    b_g2 = vrow(2 * _VEC_ROWS_PER_LAYER + 1, out_ref.shape[1])
    hid = jnp.maximum(
        jnp.dot(g_in, wg1_ref[...], preferred_element_type=jnp.float32) + b_g1, 0.0)
    out_ref[...] = jnp.dot(hid, wg2_ref[...], preferred_element_type=jnp.float32) + b_g2


# ---------------------------------------------------------------------------
# Wrapper
# ---------------------------------------------------------------------------
def egnn_network_forward(x, pos, edge_index, edge_attr, batch, x2, packed, output_shape):
    N, F = x.shape
    E = edge_index.shape[1]
    Fe = edge_attr.shape[1]
    x2 = x2.reshape(-1, 1) if x2.ndim == 1 else x2
    G, M1 = x2.shape

    x_all = jnp.concatenate([pos.astype(jnp.float32), x.astype(jnp.float32)], axis=-1)
    edges = jnp.stack([edge_index[0], edge_index[1]], axis=-1).astype(jnp.int32)   # [E, 2]
    batch_row = batch.reshape(1, N).astype(jnp.int32)

    inputs = [x_all, edge_attr.astype(jnp.float32), edges, batch_row, x2.astype(jnp.float32),
              packed["we1"], packed["we2"], packed["wc1"], packed["wn1"], packed["wn2"],
              packed["wg1"], packed["wg2"], packed["vec"]]

    # rough cost estimate so XLA schedules this small custom call sensibly
    d_in = 2 * F + Fe + 1
    h_e = 2 * d_in
    flops_layer = (2 * 2 * E * N * (POS_DIM + F)                 # packed gathers
                   + 2 * E * d_in * h_e + 2 * E * h_e * M_DIM    # edge MLP
                   + 2 * E * M_DIM * COORS_HID + 2 * E * COORS_HID
                   + 2 * E * N * (POS_DIM + M_DIM)               # fused scatter
                   + 2 * N * (F + M_DIM) * 2 * F + 2 * N * 2 * F * F)
    flops = (2 * flops_layer + 2 * G * N * F
             + 2 * G * (F + M1) * HIDDEN_SIZE + 2 * G * HIDDEN_SIZE * OUT_PAD)
    transcendentals = 2 * (2 * E * (h_e + M_DIM + COORS_HID) + 2 * N * 2 * F)
    bytes_accessed = sum(int(a.size) * a.dtype.itemsize for a in inputs) + G * OUT_PAD * 4

    vmem = pl.BlockSpec(memory_space=pltpu.MemorySpace.VMEM)
    out = pl.pallas_call(
        egnn_fused_kernel,
        out_shape=jax.ShapeDtypeStruct((G, OUT_PAD), jnp.float32),
        in_specs=[vmem] * len(inputs),
        out_specs=vmem,
        compiler_params=pltpu.CompilerParams(vmem_limit_bytes=VMEM_LIMIT_BYTES),
        cost_estimate=pl.CostEstimate(flops=int(flops),
                                      transcendentals=int(transcendentals),
                                      bytes_accessed=int(bytes_accessed)),
    )(*inputs)
    return out[:, :output_shape]


# ---------------------------------------------------------------------------
# Parameter construction (deterministic; PyTorch Linear convention [out, in])
# ---------------------------------------------------------------------------
def _xavier_normal(key, out_f, in_f):
    std = math.sqrt(2.0 / (in_f + out_f))
    return std * jax.random.normal(key, (out_f, in_f), jnp.float32)


def init_egnn_layer_params(key, feats_dim, edge_attr_dim):
    F, Fe = feats_dim, edge_attr_dim
    d_in = 2 * F + Fe + 1                      # x_i ++ x_j ++ edge_attr ++ rel_dist
    h_e = 2 * d_in
    k = jax.random.split(key, 6)
    z = lambda *s: jnp.zeros(s, jnp.float32)   # egnn-pytorch init_: zero biases
    return dict(
        w_e1=_xavier_normal(k[0], h_e, d_in), b_e1=z(h_e),                   # edge_mlp.0
        w_e2=_xavier_normal(k[1], M_DIM, h_e), b_e2=z(M_DIM),                # edge_mlp.3
        w_c1=_xavier_normal(k[2], COORS_HID, M_DIM), b_c1=z(COORS_HID),      # coors_mlp.0
        w_c2=_xavier_normal(k[3], 1, COORS_HID), b_c2=z(1),                  # coors_mlp.3
        gamma=jnp.ones((F,), jnp.float32), beta=z(F),                        # node_norm affine
        w_n1=_xavier_normal(k[4], 2 * F, F + M_DIM), b_n1=z(2 * F),          # node_mlp.0
        w_n2=_xavier_normal(k[5], F, 2 * F), b_n2=z(F))                      # node_mlp.3


def init_graph_mlp_params(key, feats_dim, model1_output_dim, output_shape):
    in_dim = feats_dim + model1_output_dim
    k1, k2, k3, k4 = jax.random.split(key, 4)
    b1 = 1.0 / math.sqrt(in_dim)
    b2 = 1.0 / math.sqrt(HIDDEN_SIZE)
    return dict(
        w_g1=jax.random.uniform(k1, (HIDDEN_SIZE, in_dim), jnp.float32, -b1, b1),
        b_g1=jax.random.uniform(k2, (HIDDEN_SIZE,), jnp.float32, -b1, b1),
        w_g2=jax.random.uniform(k3, (output_shape, HIDDEN_SIZE), jnp.float32, -b2, b2),
        b_g2=jax.random.uniform(k4, (output_shape,), jnp.float32, -b2, b2))


def pack_params(layer_params_list, mlp_params, feats_dim, edge_attr_dim, output_shape):
    """Pack all parameters into a handful of contiguous slabs (few, large DMAs).

    Weight matrices are pre-transposed to [in, out] and layer-stacked; every small
    bias / affine / width-1 vector goes into one lane-padded [rows, 256] f32 slab
    that the kernel slices statically.
    """
    F, Fe = feats_dim, edge_attr_dim
    d_in = 2 * F + Fe + 1
    h_e = 2 * d_in
    vec_w = -(-max(COORS_HID, h_e, 2 * F, HIDDEN_SIZE, OUT_PAD) // 128) * 128

    we1 = jnp.stack([p["w_e1"].T for p in layer_params_list])     # [2, d_in, h_e]
    we2 = jnp.stack([p["w_e2"].T for p in layer_params_list])     # [2, h_e, M]
    wc1 = jnp.stack([p["w_c1"].T for p in layer_params_list])     # [2, M, 4M]
    wn1 = jnp.stack([p["w_n1"].T for p in layer_params_list])     # [2, F+M, 2F]
    wn2 = jnp.stack([p["w_n2"].T for p in layer_params_list])     # [2, 2F, F]

    vec = jnp.zeros((2 * _VEC_ROWS_PER_LAYER + 2, vec_w), jnp.float32)
    for l, p in enumerate(layer_params_list):
        rows = [p["b_e1"], p["b_e2"], p["b_c1"], p["w_c2"].reshape(-1), p["b_c2"],
                p["gamma"], p["beta"], p["b_n1"], p["b_n2"]]
        for r, v in enumerate(rows):
            v = jnp.asarray(v, jnp.float32).reshape(-1)
            vec = vec.at[l * _VEC_ROWS_PER_LAYER + r, :v.shape[0]].set(v)
    vec = vec.at[2 * _VEC_ROWS_PER_LAYER + 0, :HIDDEN_SIZE].set(mlp_params["b_g1"])
    vec = vec.at[2 * _VEC_ROWS_PER_LAYER + 1, :output_shape].set(mlp_params["b_g2"])

    wg1 = mlp_params["w_g1"].T                                    # [F+M1, 128]
    wg2 = jnp.zeros((HIDDEN_SIZE, OUT_PAD), jnp.float32)
    wg2 = wg2.at[:, :output_shape].set(mlp_params["w_g2"].T)      # lane-dense padded readout
    return dict(we1=we1, we2=we2, wc1=wc1, wn1=wn1, wn2=wn2, wg1=wg1, wg2=wg2, vec=vec)


# ---------------------------------------------------------------------------
# Pure-JAX f32 reference (mirrors EGNNNetwork.forward, eval mode)
# ---------------------------------------------------------------------------
def reference_forward(x, pos, edge_index, edge_attr, batch, x2,
                      layer_params_list, mlp_params, num_graphs):
    silu = lambda v: v * jax.nn.sigmoid(v)
    coors = pos.astype(jnp.float32)
    feats = x.astype(jnp.float32)
    src, dst = edge_index[0], edge_index[1]
    N = feats.shape[0]
    for p in layer_params_list:
        rel = coors[src] - coors[dst]
        rel_dist = jnp.sum(rel * rel, axis=-1, keepdims=True)
        e_in = jnp.concatenate([feats[dst], feats[src], edge_attr, rel_dist], axis=-1)
        h = silu(e_in @ p["w_e1"].T + p["b_e1"])
        m_ij = silu(h @ p["w_e2"].T + p["b_e2"])
        c = silu(m_ij @ p["w_c1"].T + p["b_c1"])
        coor_w = c @ p["w_c2"].T + p["b_c2"]
        coors = coors + jax.ops.segment_sum(coor_w * rel, dst, num_segments=N)
        m_i = jax.ops.segment_sum(m_ij, dst, num_segments=N)
        mu = jnp.mean(feats)
        cen = feats - mu
        std = jnp.sqrt(jnp.mean(cen * cen))
        feats_n = cen / (std + LN_EPS) * p["gamma"] + p["beta"]
        hid = silu(jnp.concatenate([feats_n, m_i], axis=-1) @ p["w_n1"].T + p["b_n1"])
        feats = feats + hid @ p["w_n2"].T + p["b_n2"]
    sums = jax.ops.segment_sum(feats, batch, num_segments=num_graphs)
    cnt = jax.ops.segment_sum(jnp.ones((N,), jnp.float32), batch, num_segments=num_graphs)
    means = sums / jnp.maximum(cnt, 1.0)[:, None]
    g_in = jnp.concatenate([means, x2.reshape(num_graphs, -1)], axis=-1)
    hid = jnp.maximum(g_in @ mlp_params["w_g1"].T + mlp_params["b_g1"], 0.0)
    return hid @ mlp_params["w_g2"].T + mlp_params["b_g2"]


if __name__ == "__main__":
    # small deterministic problem (feats_dim=8, edge_attr_dim=4, out=3, x2 dim=1)
    input_shape = 8
    input_shape_edge = 4
    output_shape = 3
    model1_output_dim = 1
    N, E, G = 16, 32, 2

    key = jax.random.PRNGKey(0)
    kx, kp, ke, kea, kx2, k1, k2, k3 = jax.random.split(key, 8)

    x = jax.random.normal(kx, (N, input_shape), jnp.float32)
    pos = jax.random.normal(kp, (N, POS_DIM), jnp.float32)
    edge_index = jax.random.randint(ke, (2, E), 0, N, jnp.int32)
    edge_attr = jax.random.normal(kea, (E, input_shape_edge), jnp.float32)
    batch = jnp.concatenate([jnp.zeros(N // 2, jnp.int32),
                             jnp.ones(N - N // 2, jnp.int32)])
    x2 = jax.random.normal(kx2, (G,), jnp.float32)

    layer_params = [init_egnn_layer_params(k1, input_shape, input_shape_edge),
                    init_egnn_layer_params(k2, input_shape, input_shape_edge)]
    mlp_params = init_graph_mlp_params(k3, input_shape, model1_output_dim, output_shape)
    packed = pack_params(layer_params, mlp_params, input_shape, input_shape_edge,
                         output_shape)

    z = egnn_network_forward(x, pos, edge_index, edge_attr, batch, x2, packed, output_shape)
    z = jax.block_until_ready(z)

    z_ref = reference_forward(x, pos, edge_index, edge_attr, batch, x2,
                              layer_params, mlp_params, G)
    assert z.shape == (G, output_shape)
    assert bool(jnp.all(jnp.isfinite(z)))
    # bf16 gather/scatter operands + approx EUP reciprocals -> loose tolerance vs f32 ref
    assert bool(jnp.allclose(z, z_ref, rtol=1e-1, atol=1e-1)), (z, z_ref)
    print("KERNEL_OK")
</pallas_src>

<mosaic_0001>
module attributes {stable_mosaic.version = 11 : i64} {
  func.func @egnn_fused_kernel(%arg0: memref<16x11xf32, #tpu.memory_space<vmem>>, %arg1: memref<32x4xf32, #tpu.memory_space<vmem>>, %arg2: memref<32x2xi32, #tpu.memory_space<vmem>>, %arg3: memref<1x16xi32, #tpu.memory_space<vmem>>, %arg4: memref<2x1xf32, #tpu.memory_space<vmem>>, %arg5: memref<2x21x42xf32, #tpu.memory_space<vmem>>, %arg6: memref<2x42x64xf32, #tpu.memory_space<vmem>>, %arg7: memref<2x64x256xf32, #tpu.memory_space<vmem>>, %arg8: memref<2x72x16xf32, #tpu.memory_space<vmem>>, %arg9: memref<2x16x8xf32, #tpu.memory_space<vmem>>, %arg10: memref<9x128xf32, #tpu.memory_space<vmem>>, %arg11: memref<128x128xf32, #tpu.memory_space<vmem>>, %arg12: memref<20x256xf32, #tpu.memory_space<vmem>>, %arg13: memref<2x128xf32, #tpu.memory_space<vmem>>) attributes {dimension_semantics = [], scalar_prefetch = 0 : i64, scratch_operands = 0 : i64, tpu.core_type = #tpu.core_type<tc>} {
    %c0 = arith.constant 0 : index
    %c0_0 = arith.constant 0 : index
    %0 = vector.load %arg0[%c0, %c0_0] : memref<16x11xf32, #tpu.memory_space<vmem>>, vector<16x11xf32>
    %c0_1 = arith.constant 0 : index
    %c0_2 = arith.constant 0 : index
    %1 = vector.load %arg1[%c0_1, %c0_2] : memref<32x4xf32, #tpu.memory_space<vmem>>, vector<32x4xf32>
    %c0_3 = arith.constant 0 : index
    %c0_4 = arith.constant 0 : index
    %2 = vector.load %arg2[%c0_3, %c0_4] : memref<32x2xi32, #tpu.memory_space<vmem>>, vector<32x2xi32>
    %3 = tpu.iota {dimensions = array<i32: 0>} : vector<2x16xi32>
    %c0_5 = arith.constant 0 : index
    %c0_6 = arith.constant 0 : index
    %4 = vector.load %arg3[%c0_5, %c0_6] : memref<1x16xi32, #tpu.memory_space<vmem>>, vector<1x16xi32>
    %5 = vector.broadcast %4 : vector<1x16xi32> to vector<2x16xi32>
    %6 = arith.cmpi eq, %3, %5 : vector<2x16xi32>
    %7 = arith.extui %6 : vector<2x16xi1> to vector<2x16xi32>
    %8 = arith.sitofp %7 : vector<2x16xi32> to vector<2x16xf32>
    %9 = arith.truncf %8 : vector<2x16xf32> to vector<2x16xbf16>
    %10 = arith.extui %6 : vector<2x16xi1> to vector<2x16xi32>
    %11 = arith.sitofp %10 : vector<2x16xi32> to vector<2x16xf32>
    %cst = arith.constant dense<0.000000e+00> : vector<2xf32>
    %12 = vector.multi_reduction <add>, %11, %cst [1] : vector<2x16xf32> to vector<2xf32>
    %13 = vector.shape_cast %12 : vector<2xf32> to vector<2x1xf32>
    %cst_7 = arith.constant 1.000000e+00 : f32
    %14 = vector.broadcast %cst_7 : f32 to vector<2x1xf32>
    %15 = arith.maximumf %13, %14 : vector<2x1xf32>
    %16 = tpu.reciprocal %15 {approx = true} : vector<2x1xf32> -> vector<2x1xf32>
    %c0_8 = arith.constant 0 : index
    %c0_9 = arith.constant 0 : index
    %17 = vector.load %arg12[%c0_8, %c0_9] : memref<20x256xf32, #tpu.memory_space<vmem>>, vector<1x42xf32>
    %c1 = arith.constant 1 : index
    %c0_10 = arith.constant 0 : index
    %18 = vector.load %arg12[%c1, %c0_10] : memref<20x256xf32, #tpu.memory_space<vmem>>, vector<1x64xf32>
    %c2 = arith.constant 2 : index
    %c0_11 = arith.constant 0 : index
    %19 = vector.load %arg12[%c2, %c0_11] : memref<20x256xf32, #tpu.memory_space<vmem>>, vector<1x256xf32>
    %c3 = arith.constant 3 : index
    %c0_12 = arith.constant 0 : index
    %20 = vector.load %arg12[%c3, %c0_12] : memref<20x256xf32, #tpu.memory_space<vmem>>, vector<1x256xf32>
    %c4 = arith.constant 4 : index
    %c0_13 = arith.constant 0 : index
    %21 = vector.load %arg12[%c4, %c0_13] : memref<20x256xf32, #tpu.memory_space<vmem>>, vector<1x1xf32>
    %c5 = arith.constant 5 : index
    %c0_14 = arith.constant 0 : index
    %22 = vector.load %arg12[%c5, %c0_14] : memref<20x256xf32, #tpu.memory_space<vmem>>, vector<1x8xf32>
    %c6 = arith.constant 6 : index
    %c0_15 = arith.constant 0 : index
    %23 = vector.load %arg12[%c6, %c0_15] : memref<20x256xf32, #tpu.memory_space<vmem>>, vector<1x8xf32>
    %c7 = arith.constant 7 : index
    %c0_16 = arith.constant 0 : index
    %24 = vector.load %arg12[%c7, %c0_16] : memref<20x256xf32, #tpu.memory_space<vmem>>, vector<1x16xf32>
    %c8 = arith.constant 8 : index
    %c0_17 = arith.constant 0 : index
    %25 = vector.load %arg12[%c8, %c0_17] : memref<20x256xf32, #tpu.memory_space<vmem>>, vector<1x8xf32>
    %c0_18 = arith.constant 0 : index
    %c0_19 = arith.constant 0 : index
    %c0_20 = arith.constant 0 : index
    %26 = vector.load %arg5[%c0_18, %c0_19, %c0_20] : memref<2x21x42xf32, #tpu.memory_space<vmem>>, vector<1x21x42xf32>
    %27 = vector.shape_cast %26 : vector<1x21x42xf32> to vector<21x42xf32>
    %c0_21 = arith.constant 0 : index
    %c0_22 = arith.constant 0 : index
    %c0_23 = arith.constant 0 : index
    %28 = vector.load %arg6[%c0_21, %c0_22, %c0_23] : memref<2x42x64xf32, #tpu.memory_space<vmem>>, vector<1x42x64xf32>
    %29 = vector.shape_cast %28 : vector<1x42x64xf32> to vector<42x64xf32>
    %c0_24 = arith.constant 0 : index
    %c0_25 = arith.constant 0 : index
    %c0_26 = arith.constant 0 : index
    %30 = vector.load %arg7[%c0_24, %c0_25, %c0_26] : memref<2x64x256xf32, #tpu.memory_space<vmem>>, vector<1x64x256xf32>
    %31 = vector.shape_cast %30 : vector<1x64x256xf32> to vector<64x256xf32>
    %c0_27 = arith.constant 0 : index
    %c0_28 = arith.constant 0 : index
    %c0_29 = arith.constant 0 : index
    %32 = vector.load %arg8[%c0_27, %c0_28, %c0_29] : memref<2x72x16xf32, #tpu.memory_space<vmem>>, vector<1x72x16xf32>
    %33 = vector.shape_cast %32 : vector<1x72x16xf32> to vector<72x16xf32>
    %c0_30 = arith.constant 0 : index
    %c0_31 = arith.constant 0 : index
    %c0_32 = arith.constant 0 : index
    %34 = vector.load %arg9[%c0_30, %c0_31, %c0_32] : memref<2x16x8xf32, #tpu.memory_space<vmem>>, vector<1x16x8xf32>
    %35 = vector.shape_cast %34 : vector<1x16x8xf32> to vector<16x8xf32>
    %36 = arith.truncf %0 : vector<16x11xf32> to vector<16x11xbf16>
    %cst_33 = arith.constant 0.000000e+00 : f32
    %37 = vector.broadcast %cst_33 : f32 to vector<16x67xf32>
    %38 = tpu.iota {dimensions = array<i32: 1>} : vector<32x16xi32>
    %39 = vector.extract_strided_slice %2 {offsets = [0, 0], sizes = [32, 1], strides = [1, 1]} : vector<32x2xi32> to vector<32x1xi32>
    %40 = vector.broadcast %39 : vector<32x1xi32> to vector<32x16xi32>
    %41 = arith.cmpi eq, %38, %40 : vector<32x16xi32>
    %42 = arith.extui %41 : vector<32x16xi1> to vector<32x16xi32>
    %43 = arith.sitofp %42 : vector<32x16xi32> to vector<32x16xf32>
    %44 = arith.truncf %43 : vector<32x16xf32> to vector<32x16xbf16>
    %45 = vector.extract_strided_slice %2 {offsets = [0, 1], sizes = [32, 1], strides = [1, 1]} : vector<32x2xi32> to vector<32x1xi32>
    %46 = vector.broadcast %45 : vector<32x1xi32> to vector<32x16xi32>
    %47 = arith.cmpi eq, %38, %46 : vector<32x16xi32>
    %48 = arith.extui %47 : vector<32x16xi1> to vector<32x16xi32>
    %49 = arith.sitofp %48 : vector<32x16xi32> to vector<32x16xf32>
    %50 = arith.truncf %49 : vector<32x16xf32> to vector<32x16xbf16>
    %cst_34 = arith.constant dense<0.000000e+00> : vector<32x11xf32>
    %51 = tpu.matmul %44, %36, %cst_34 {dimension_numbers = #tpu.dot_dimension_numbers<[1], [0], [0], [1], [0, 0, 1, 1], [], []>} : vector<32x16xbf16>, vector<16x11xbf16>, vector<32x11xf32> -> vector<32x11xf32>
    %cst_35 = arith.constant dense<0.000000e+00> : vector<32x11xf32>
    %52 = tpu.matmul %50, %36, %cst_35 {dimension_numbers = #tpu.dot_dimension_numbers<[1], [0], [0], [1], [0, 0, 1, 1], [], []>} : vector<32x16xbf16>, vector<16x11xbf16>, vector<32x11xf32> -> vector<32x11xf32>
    %53 = vector.extract_strided_slice %51 {offsets = [0, 0], sizes = [32, 3], strides = [1, 1]} : vector<32x11xf32> to vector<32x3xf32>
    %54 = vector.extract_strided_slice %52 {offsets = [0, 0], sizes = [32, 3], strides = [1, 1]} : vector<32x11xf32> to vector<32x3xf32>
    %55 = arith.subf %53, %54 : vector<32x3xf32>
    %56 = arith.mulf %55, %55 : vector<32x3xf32>
    %cst_36 = arith.constant dense<0.000000e+00> : vector<32xf32>
    %57 = vector.multi_reduction <add>, %56, %cst_36 [1] : vector<32x3xf32> to vector<32xf32>
    %58 = vector.shape_cast %57 : vector<32xf32> to vector<32x1xf32>
    %59 = vector.extract_strided_slice %52 {offsets = [0, 3], sizes = [32, 8], strides = [1, 1]} : vector<32x11xf32> to vector<32x8xf32>
    %60 = vector.extract_strided_slice %51 {offsets = [0, 3], sizes = [32, 8], strides = [1, 1]} : vector<32x11xf32> to vector<32x8xf32>
    %61 = tpu.concatenate %59, %60, %1, %58 in 1 : vector<32x8xf32>, vector<32x8xf32>, vector<32x4xf32>, vector<32x1xf32> -> vector<32x21xf32>
    %cst_37 = arith.constant dense<0.000000e+00> : vector<32x42xf32>
    %62 = tpu.matmul %61, %27, %cst_37 {dimension_numbers = #tpu.dot_dimension_numbers<[1], [0], [0], [1], [0, 0, 1, 1], [], []>} : vector<32x21xf32>, vector<21x42xf32>, vector<32x42xf32> -> vector<32x42xf32>
    %63 = vector.broadcast %17 : vector<1x42xf32> to vector<32x42xf32>
    %64 = arith.addf %62, %63 : vector<32x42xf32>
    %cst_38 = arith.constant 0.000000e+00 : f32
    %65 = vector.broadcast %cst_38 : f32 to vector<32x42xf32>
    %66 = arith.subf %65, %64 : vector<32x42xf32>
    %67 = math.exp %66 : vector<32x42xf32>
    %cst_39 = arith.constant 1.000000e+00 : f32
    %68 = vector.broadcast %cst_39 : f32 to vector<32x42xf32>
    %69 = arith.addf %68, %67 : vector<32x42xf32>
    %70 = tpu.reciprocal %69 {approx = true} : vector<32x42xf32> -> vector<32x42xf32>
    %71 = arith.mulf %64, %70 : vector<32x42xf32>
    %cst_40 = arith.constant dense<0.000000e+00> : vector<32x64xf32>
    %72 = tpu.matmul %71, %29, %cst_40 {dimension_numbers = #tpu.dot_dimension_numbers<[1], [0], [0], [1], [0, 0, 1, 1], [], []>} : vector<32x42xf32>, vector<42x64xf32>, vector<32x64xf32> -> vector<32x64xf32>
    %73 = vector.broadcast %18 : vector<1x64xf32> to vector<32x64xf32>
    %74 = arith.addf %72, %73 : vector<32x64xf32>
    %cst_41 = arith.constant 0.000000e+00 : f32
    %75 = vector.broadcast %cst_41 : f32 to vector<32x64xf32>
    %76 = arith.subf %75, %74 : vector<32x64xf32>
    %77 = math.exp %76 : vector<32x64xf32>
    %cst_42 = arith.constant 1.000000e+00 : f32
    %78 = vector.broadcast %cst_42 : f32 to vector<32x64xf32>
    %79 = arith.addf %78, %77 : vector<32x64xf32>
    %80 = tpu.reciprocal %79 {approx = true} : vector<32x64xf32> -> vector<32x64xf32>
    %81 = arith.mulf %74, %80 : vector<32x64xf32>
    %cst_43 = arith.constant dense<0.000000e+00> : vector<32x256xf32>
    %82 = tpu.matmul %81, %31, %cst_43 {dimension_numbers = #tpu.dot_dimension_numbers<[1], [0], [0], [1], [0, 0, 1, 1], [], []>} : vector<32x64xf32>, vector<64x256xf32>, vector<32x256xf32> -> vector<32x256xf32>
    %83 = vector.broadcast %19 : vector<1x256xf32> to vector<32x256xf32>
    %84 = arith.addf %82, %83 : vector<32x256xf32>
    %cst_44 = arith.constant 0.000000e+00 : f32
    %85 = vector.broadcast %cst_44 : f32 to vector<32x256xf32>
    %86 = arith.subf %85, %84 : vector<32x256xf32>
    %87 = math.exp %86 : vector<32x256xf32>
    %cst_45 = arith.constant 1.000000e+00 : f32
    %88 = vector.broadcast %cst_45 : f32 to vector<32x256xf32>
    %89 = arith.addf %88, %87 : vector<32x256xf32>
    %90 = tpu.reciprocal %89 {approx = true} : vector<32x256xf32> -> vector<32x256xf32>
    %91 = arith.mulf %84, %90 : vector<32x256xf32>
    %92 = vector.broadcast %20 : vector<1x256xf32> to vector<32x256xf32>
    %93 = arith.mulf %91, %92 : vector<32x256xf32>
    %cst_46 = arith.constant dense<0.000000e+00> : vector<32xf32>
    %94 = vector.multi_reduction <add>, %93, %cst_46 [1] : vector<32x256xf32> to vector<32xf32>
    %95 = vector.shape_cast %94 : vector<32xf32> to vector<32x1xf32>
    %96 = vector.broadcast %21 : vector<1x1xf32> to vector<32x1xf32>
    %97 = arith.addf %95, %96 : vector<32x1xf32>
    %98 = vector.broadcast %97 : vector<32x1xf32> to vector<32x3xf32>
    %99 = arith.mulf %98, %55 : vector<32x3xf32>
    %100 = tpu.concatenate %99, %81 in 1 : vector<32x3xf32>, vector<32x64xf32> -> vector<32x67xf32>
    %101 = arith.truncf %100 : vector<32x67xf32> to vector<32x67xbf16>
    %cst_47 = arith.constant dense<0.000000e+00> : vector<16x67xf32>
    %102 = tpu.matmul %50, %101, %cst_47 {dimension_numbers = #tpu.dot_dimension_numbers<[0], [0], [1], [1], [0, 1, 1, 1], [], []>} : vector<32x16xbf16>, vector<32x67xbf16>, vector<16x67xf32> -> vector<16x67xf32>
    %103 = arith.addf %37, %102 : vector<16x67xf32>
    %104 = vector.extract_strided_slice %0 {offsets = [0, 0], sizes = [16, 3], strides = [1, 1]} : vector<16x11xf32> to vector<16x3xf32>
    %105 = vector.extract_strided_slice %103 {offsets = [0, 0], sizes = [16, 3], strides = [1, 1]} : vector<16x67xf32> to vector<16x3xf32>
    %106 = arith.addf %104, %105 : vector<16x3xf32>
    %107 = vector.extract_strided_slice %103 {offsets = [0, 3], sizes = [16, 64], strides = [1, 1]} : vector<16x67xf32> to vector<16x64xf32>
    %108 = vector.extract_strided_slice %0 {offsets = [0, 3], sizes = [16, 8], strides = [1, 1]} : vector<16x11xf32> to vector<16x8xf32>
    %cst_48 = arith.constant dense<0.000000e+00> : vector<16xf32>
    %109 = vector.multi_reduction <add>, %108, %cst_48 [1] : vector<16x8xf32> to vector<16xf32>
    %110 = vector.shape_cast %109 : vector<16xf32> to vector<16x1xf32>
    %cst_49 = arith.constant dense<0.000000e+00> : vector<1xf32>
    %111 = vector.multi_reduction <add>, %110, %cst_49 [0] : vector<16x1xf32> to vector<1xf32>
    %112 = vector.shape_cast %111 : vector<1xf32> to vector<1x1xf32>
    %cst_50 = arith.constant 7.812500e-03 : f32
    %113 = vector.broadcast %cst_50 : f32 to vector<1x1xf32>
    %114 = arith.mulf %112, %113 : vector<1x1xf32>
    %115 = vector.broadcast %114 : vector<1x1xf32> to vector<16x8xf32>
    %116 = arith.subf %108, %115 : vector<16x8xf32>
    %117 = arith.mulf %116, %116 : vector<16x8xf32>
    %cst_51 = arith.constant dense<0.000000e+00> : vector<16xf32>
    %118 = vector.multi_reduction <add>, %117, %cst_51 [1] : vector<16x8xf32> to vector<16xf32>
    %119 = vector.shape_cast %118 : vector<16xf32> to vector<16x1xf32>
    %cst_52 = arith.constant dense<0.000000e+00> : vector<1xf32>
    %120 = vector.multi_reduction <add>, %119, %cst_52 [0] : vector<16x1xf32> to vector<1xf32>
    %121 = vector.shape_cast %120 : vector<1xf32> to vector<1x1xf32>
    %cst_53 = arith.constant 7.812500e-03 : f32
    %122 = vector.broadcast %cst_53 : f32 to vector<1x1xf32>
    %123 = arith.mulf %121, %122 : vector<1x1xf32>
    %124 = math.sqrt %123 : vector<1x1xf32>
    %cst_54 = arith.constant 9.99999974E-6 : f32
    %125 = vector.broadcast %cst_54 : f32 to vector<1x1xf32>
    %126 = arith.addf %124, %125 : vector<1x1xf32>
    %127 = tpu.reciprocal %126 {approx = true} : vector<1x1xf32> -> vector<1x1xf32>
    %128 = vector.broadcast %127 : vector<1x1xf32> to vector<16x8xf32>
    %129 = arith.mulf %116, %128 : vector<16x8xf32>
    %130 = vector.broadcast %22 : vector<1x8xf32> to vector<16x8xf32>
    %131 = arith.mulf %129, %130 : vector<16x8xf32>
    %132 = vector.broadcast %23 : vector<1x8xf32> to vector<16x8xf32>
    %133 = arith.addf %131, %132 : vector<16x8xf32>
    %134 = tpu.concatenate %133, %107 in 1 : vector<16x8xf32>, vector<16x64xf32> -> vector<16x72xf32>
    %cst_55 = arith.constant dense<0.000000e+00> : vector<16x16xf32>
    %135 = tpu.matmul %134, %33, %cst_55 {dimension_numbers = #tpu.dot_dimension_numbers<[1], [0], [0], [1], [0, 0, 1, 1], [], []>} : vector<16x72xf32>, vector<72x16xf32>, vector<16x16xf32> -> vector<16x16xf32>
    %136 = vector.broadcast %24 : vector<1x16xf32> to vector<16x16xf32>
    %137 = arith.addf %135, %136 : vector<16x16xf32>
    %cst_56 = arith.constant 0.000000e+00 : f32
    %138 = vector.broadcast %cst_56 : f32 to vector<16x16xf32>
    %139 = arith.subf %138, %137 : vector<16x16xf32>
    %140 = math.exp %139 : vector<16x16xf32>
    %cst_57 = arith.constant 1.000000e+00 : f32
    %141 = vector.broadcast %cst_57 : f32 to vector<16x16xf32>
    %142 = arith.addf %141, %140 : vector<16x16xf32>
    %143 = tpu.reciprocal %142 {approx = true} : vector<16x16xf32> -> vector<16x16xf32>
    %144 = arith.mulf %137, %143 : vector<16x16xf32>
    %cst_58 = arith.constant dense<0.000000e+00> : vector<16x8xf32>
    %145 = tpu.matmul %144, %35, %cst_58 {dimension_numbers = #tpu.dot_dimension_numbers<[1], [0], [0], [1], [0, 0, 1, 1], [], []>} : vector<16x16xf32>, vector<16x8xf32>, vector<16x8xf32> -> vector<16x8xf32>
    %146 = arith.addf %108, %145 : vector<16x8xf32>
    %147 = vector.broadcast %25 : vector<1x8xf32> to vector<16x8xf32>
    %148 = arith.addf %146, %147 : vector<16x8xf32>
    %149 = tpu.concatenate %106, %148 in 1 : vector<16x3xf32>, vector<16x8xf32> -> vector<16x11xf32>
    %c9 = arith.constant 9 : index
    %c0_59 = arith.constant 0 : index
    %150 = vector.load %arg12[%c9, %c0_59] : memref<20x256xf32, #tpu.memory_space<vmem>>, vector<1x42xf32>
    %c10 = arith.constant 10 : index
    %c0_60 = arith.constant 0 : index
    %151 = vector.load %arg12[%c10, %c0_60] : memref<20x256xf32, #tpu.memory_space<vmem>>, vector<1x64xf32>
    %c11 = arith.constant 11 : index
    %c0_61 = arith.constant 0 : index
    %152 = vector.load %arg12[%c11, %c0_61] : memref<20x256xf32, #tpu.memory_space<vmem>>, vector<1x256xf32>
    %c12 = arith.constant 12 : index
    %c0_62 = arith.constant 0 : index
    %153 = vector.load %arg12[%c12, %c0_62] : memref<20x256xf32, #tpu.memory_space<vmem>>, vector<1x256xf32>
    %c13 = arith.constant 13 : index
    %c0_63 = arith.constant 0 : index
    %154 = vector.load %arg12[%c13, %c0_63] : memref<20x256xf32, #tpu.memory_space<vmem>>, vector<1x1xf32>
    %c14 = arith.constant 14 : index
    %c0_64 = arith.constant 0 : index
    %155 = vector.load %arg12[%c14, %c0_64] : memref<20x256xf32, #tpu.memory_space<vmem>>, vector<1x8xf32>
    %c15 = arith.constant 15 : index
    %c0_65 = arith.constant 0 : index
    %156 = vector.load %arg12[%c15, %c0_65] : memref<20x256xf32, #tpu.memory_space<vmem>>, vector<1x8xf32>
    %c16 = arith.constant 16 : index
    %c0_66 = arith.constant 0 : index
    %157 = vector.load %arg12[%c16, %c0_66] : memref<20x256xf32, #tpu.memory_space<vmem>>, vector<1x16xf32>
    %c17 = arith.constant 17 : index
    %c0_67 = arith.constant 0 : index
    %158 = vector.load %arg12[%c17, %c0_67] : memref<20x256xf32, #tpu.memory_space<vmem>>, vector<1x8xf32>
    %c1_68 = arith.constant 1 : index
    %c0_69 = arith.constant 0 : index
    %c0_70 = arith.constant 0 : index
    %159 = vector.load %arg5[%c1_68, %c0_69, %c0_70] : memref<2x21x42xf32, #tpu.memory_space<vmem>>, vector<1x21x42xf32>
    %160 = vector.shape_cast %159 : vector<1x21x42xf32> to vector<21x42xf32>
    %c1_71 = arith.constant 1 : index
    %c0_72 = arith.constant 0 : index
    %c0_73 = arith.constant 0 : index
    %161 = vector.load %arg6[%c1_71, %c0_72, %c0_73] : memref<2x42x64xf32, #tpu.memory_space<vmem>>, vector<1x42x64xf32>
    %162 = vector.shape_cast %161 : vector<1x42x64xf32> to vector<42x64xf32>
    %c1_74 = arith.constant 1 : index
    %c0_75 = arith.constant 0 : index
    %c0_76 = arith.constant 0 : index
    %163 = vector.load %arg7[%c1_74, %c0_75, %c0_76] : memref<2x64x256xf32, #tpu.memory_space<vmem>>, vector<1x64x256xf32>
    %164 = vector.shape_cast %163 : vector<1x64x256xf32> to vector<64x256xf32>
    %c1_77 = arith.constant 1 : index
    %c0_78 = arith.constant 0 : index
    %c0_79 = arith.constant 0 : index
    %165 = vector.load %arg8[%c1_77, %c0_78, %c0_79] : memref<2x72x16xf32, #tpu.memory_space<vmem>>, vector<1x72x16xf32>
    %166 = vector.shape_cast %165 : vector<1x72x16xf32> to vector<72x16xf32>
    %c1_80 = arith.constant 1 : index
    %c0_81 = arith.constant 0 : index
    %c0_82 = arith.constant 0 : index
    %167 = vector.load %arg9[%c1_80, %c0_81, %c0_82] : memref<2x16x8xf32, #tpu.memory_space<vmem>>, vector<1x16x8xf32>
    %168 = vector.shape_cast %167 : vector<1x16x8xf32> to vector<16x8xf32>
    %169 = arith.truncf %149 : vector<16x11xf32> to vector<16x11xbf16>
    %cst_83 = arith.constant 0.000000e+00 : f32
    %170 = vector.broadcast %cst_83 : f32 to vector<16x67xf32>
    %171 = tpu.iota {dimensions = array<i32: 1>} : vector<32x16xi32>
    %172 = vector.extract_strided_slice %2 {offsets = [0, 0], sizes = [32, 1], strides = [1, 1]} : vector<32x2xi32> to vector<32x1xi32>
    %173 = vector.broadcast %172 : vector<32x1xi32> to vector<32x16xi32>
    %174 = arith.cmpi eq, %171, %173 : vector<32x16xi32>
    %175 = arith.extui %174 : vector<32x16xi1> to vector<32x16xi32>
    %176 = arith.sitofp %175 : vector<32x16xi32> to vector<32x16xf32>
    %177 = arith.truncf %176 : vector<32x16xf32> to vector<32x16xbf16>
    %178 = vector.extract_strided_slice %2 {offsets = [0, 1], sizes = [32, 1], strides = [1, 1]} : vector<32x2xi32> to vector<32x1xi32>
    %179 = vector.broadcast %178 : vector<32x1xi32> to vector<32x16xi32>
    %180 = arith.cmpi eq, %171, %179 : vector<32x16xi32>
    %181 = arith.extui %180 : vector<32x16xi1> to vector<32x16xi32>
    %182 = arith.sitofp %181 : vector<32x16xi32> to vector<32x16xf32>
    %183 = arith.truncf %182 : vector<32x16xf32> to vector<32x16xbf16>
    %cst_84 = arith.constant dense<0.000000e+00> : vector<32x11xf32>
    %184 = tpu.matmul %177, %169, %cst_84 {dimension_numbers = #tpu.dot_dimension_numbers<[1], [0], [0], [1], [0, 0, 1, 1], [], []>} : vector<32x16xbf16>, vector<16x11xbf16>, vector<32x11xf32> -> vector<32x11xf32>
    %cst_85 = arith.constant dense<0.000000e+00> : vector<32x11xf32>
    %185 = tpu.matmul %183, %169, %cst_85 {dimension_numbers = #tpu.dot_dimension_numbers<[1], [0], [0], [1], [0, 0, 1, 1], [], []>} : vector<32x16xbf16>, vector<16x11xbf16>, vector<32x11xf32> -> vector<32x11xf32>
    %186 = vector.extract_strided_slice %184 {offsets = [0, 0], sizes = [32, 3], strides = [1, 1]} : vector<32x11xf32> to vector<32x3xf32>
    %187 = vector.extract_strided_slice %185 {offsets = [0, 0], sizes = [32, 3], strides = [1, 1]} : vector<32x11xf32> to vector<32x3xf32>
    %188 = arith.subf %186, %187 : vector<32x3xf32>
    %189 = arith.mulf %188, %188 : vector<32x3xf32>
    %cst_86 = arith.constant dense<0.000000e+00> : vector<32xf32>
    %190 = vector.multi_reduction <add>, %189, %cst_86 [1] : vector<32x3xf32> to vector<32xf32>
    %191 = vector.shape_cast %190 : vector<32xf32> to vector<32x1xf32>
    %192 = vector.extract_strided_slice %185 {offsets = [0, 3], sizes = [32, 8], strides = [1, 1]} : vector<32x11xf32> to vector<32x8xf32>
    %193 = vector.extract_strided_slice %184 {offsets = [0, 3], sizes = [32, 8], strides = [1, 1]} : vector<32x11xf32> to vector<32x8xf32>
    %194 = tpu.concatenate %192, %193, %1, %191 in 1 : vector<32x8xf32>, vector<32x8xf32>, vector<32x4xf32>, vector<32x1xf32> -> vector<32x21xf32>
    %cst_87 = arith.constant dense<0.000000e+00> : vector<32x42xf32>
    %195 = tpu.matmul %194, %160, %cst_87 {dimension_numbers = #tpu.dot_dimension_numbers<[1], [0], [0], [1], [0, 0, 1, 1], [], []>} : vector<32x21xf32>, vector<21x42xf32>, vector<32x42xf32> -> vector<32x42xf32>
    %196 = vector.broadcast %150 : vector<1x42xf32> to vector<32x42xf32>
    %197 = arith.addf %195, %196 : vector<32x42xf32>
    %cst_88 = arith.constant 0.000000e+00 : f32
    %198 = vector.broadcast %cst_88 : f32 to vector<32x42xf32>
    %199 = arith.subf %198, %197 : vector<32x42xf32>
    %200 = math.exp %199 : vector<32x42xf32>
    %cst_89 = arith.constant 1.000000e+00 : f32
    %201 = vector.broadcast %cst_89 : f32 to vector<32x42xf32>
    %202 = arith.addf %201, %200 : vector<32x42xf32>
    %203 = tpu.reciprocal %202 {approx = true} : vector<32x42xf32> -> vector<32x42xf32>
    %204 = arith.mulf %197, %203 : vector<32x42xf32>
    %cst_90 = arith.constant dense<0.000000e+00> : vector<32x64xf32>
    %205 = tpu.matmul %204, %162, %cst_90 {dimension_numbers = #tpu.dot_dimension_numbers<[1], [0], [0], [1], [0, 0, 1, 1], [], []>} : vector<32x42xf32>, vector<42x64xf32>, vector<32x64xf32> -> vector<32x64xf32>
    %206 = vector.broadcast %151 : vector<1x64xf32> to vector<32x64xf32>
    %207 = arith.addf %205, %206 : vector<32x64xf32>
    %cst_91 = arith.constant 0.000000e+00 : f32
    %208 = vector.broadcast %cst_91 : f32 to vector<32x64xf32>
    %209 = arith.subf %208, %207 : vector<32x64xf32>
    %210 = math.exp %209 : vector<32x64xf32>
    %cst_92 = arith.constant 1.000000e+00 : f32
    %211 = vector.broadcast %cst_92 : f32 to vector<32x64xf32>
    %212 = arith.addf %211, %210 : vector<32x64xf32>
    %213 = tpu.reciprocal %212 {approx = true} : vector<32x64xf32> -> vector<32x64xf32>
    %214 = arith.mulf %207, %213 : vector<32x64xf32>
    %cst_93 = arith.constant dense<0.000000e+00> : vector<32x256xf32>
    %215 = tpu.matmul %214, %164, %cst_93 {dimension_numbers = #tpu.dot_dimension_numbers<[1], [0], [0], [1], [0, 0, 1, 1], [], []>} : vector<32x64xf32>, vector<64x256xf32>, vector<32x256xf32> -> vector<32x256xf32>
    %216 = vector.broadcast %152 : vector<1x256xf32> to vector<32x256xf32>
    %217 = arith.addf %215, %216 : vector<32x256xf32>
    %cst_94 = arith.constant 0.000000e+00 : f32
    %218 = vector.broadcast %cst_94 : f32 to vector<32x256xf32>
    %219 = arith.subf %218, %217 : vector<32x256xf32>
    %220 = math.exp %219 : vector<32x256xf32>
    %cst_95 = arith.constant 1.000000e+00 : f32
    %221 = vector.broadcast %cst_95 : f32 to vector<32x256xf32>
    %222 = arith.addf %221, %220 : vector<32x256xf32>
    %223 = tpu.reciprocal %222 {approx = true} : vector<32x256xf32> -> vector<32x256xf32>
    %224 = arith.mulf %217, %223 : vector<32x256xf32>
    %225 = vector.broadcast %153 : vector<1x256xf32> to vector<32x256xf32>
    %226 = arith.mulf %224, %225 : vector<32x256xf32>
    %cst_96 = arith.constant dense<0.000000e+00> : vector<32xf32>
    %227 = vector.multi_reduction <add>, %226, %cst_96 [1] : vector<32x256xf32> to vector<32xf32>
    %228 = vector.shape_cast %227 : vector<32xf32> to vector<32x1xf32>
    %229 = vector.broadcast %154 : vector<1x1xf32> to vector<32x1xf32>
    %230 = arith.addf %228, %229 : vector<32x1xf32>
    %231 = vector.broadcast %230 : vector<32x1xf32> to vector<32x3xf32>
    %232 = arith.mulf %231, %188 : vector<32x3xf32>
    %233 = tpu.concatenate %232, %214 in 1 : vector<32x3xf32>, vector<32x64xf32> -> vector<32x67xf32>
    %234 = arith.truncf %233 : vector<32x67xf32> to vector<32x67xbf16>
    %cst_97 = arith.constant dense<0.000000e+00> : vector<16x67xf32>
    %235 = tpu.matmul %183, %234, %cst_97 {dimension_numbers = #tpu.dot_dimension_numbers<[0], [0], [1], [1], [0, 1, 1, 1], [], []>} : vector<32x16xbf16>, vector<32x67xbf16>, vector<16x67xf32> -> vector<16x67xf32>
    %236 = arith.addf %170, %235 : vector<16x67xf32>
    %237 = vector.extract_strided_slice %149 {offsets = [0, 0], sizes = [16, 3], strides = [1, 1]} : vector<16x11xf32> to vector<16x3xf32>
    %238 = vector.extract_strided_slice %236 {offsets = [0, 0], sizes = [16, 3], strides = [1, 1]} : vector<16x67xf32> to vector<16x3xf32>
    %239 = arith.addf %237, %238 : vector<16x3xf32>
    %240 = vector.extract_strided_slice %236 {offsets = [0, 3], sizes = [16, 64], strides = [1, 1]} : vector<16x67xf32> to vector<16x64xf32>
    %241 = vector.extract_strided_slice %149 {offsets = [0, 3], sizes = [16, 8], strides = [1, 1]} : vector<16x11xf32> to vector<16x8xf32>
    %cst_98 = arith.constant dense<0.000000e+00> : vector<16xf32>
    %242 = vector.multi_reduction <add>, %241, %cst_98 [1] : vector<16x8xf32> to vector<16xf32>
    %243 = vector.shape_cast %242 : vector<16xf32> to vector<16x1xf32>
    %cst_99 = arith.constant dense<0.000000e+00> : vector<1xf32>
    %244 = vector.multi_reduction <add>, %243, %cst_99 [0] : vector<16x1xf32> to vector<1xf32>
    %245 = vector.shape_cast %244 : vector<1xf32> to vector<1x1xf32>
    %cst_100 = arith.constant 7.812500e-03 : f32
    %246 = vector.broadcast %cst_100 : f32 to vector<1x1xf32>
    %247 = arith.mulf %245, %246 : vector<1x1xf32>
    %248 = vector.broadcast %247 : vector<1x1xf32> to vector<16x8xf32>
    %249 = arith.subf %241, %248 : vector<16x8xf32>
    %250 = arith.mulf %249, %249 : vector<16x8xf32>
    %cst_101 = arith.constant dense<0.000000e+00> : vector<16xf32>
    %251 = vector.multi_reduction <add>, %250, %cst_101 [1] : vector<16x8xf32> to vector<16xf32>
    %252 = vector.shape_cast %251 : vector<16xf32> to vector<16x1xf32>
    %cst_102 = arith.constant dense<0.000000e+00> : vector<1xf32>
    %253 = vector.multi_reduction <add>, %252, %cst_102 [0] : vector<16x1xf32> to vector<1xf32>
    %254 = vector.shape_cast %253 : vector<1xf32> to vector<1x1xf32>
    %cst_103 = arith.constant 7.812500e-03 : f32
    %255 = vector.broadcast %cst_103 : f32 to vector<1x1xf32>
    %256 = arith.mulf %254, %255 : vector<1x1xf32>
    %257 = math.sqrt %256 : vector<1x1xf32>
    %cst_104 = arith.constant 9.99999974E-6 : f32
    %258 = vector.broadcast %cst_104 : f32 to vector<1x1xf32>
    %259 = arith.addf %257, %258 : vector<1x1xf32>
    %260 = tpu.reciprocal %259 {approx = true} : vector<1x1xf32> -> vector<1x1xf32>
    %261 = vector.broadcast %260 : vector<1x1xf32> to vector<16x8xf32>
    %262 = arith.mulf %249, %261 : vector<16x8xf32>
    %263 = vector.broadcast %155 : vector<1x8xf32> to vector<16x8xf32>
    %264 = arith.mulf %262, %263 : vector<16x8xf32>
    %265 = vector.broadcast %156 : vector<1x8xf32> to vector<16x8xf32>
    %266 = arith.addf %264, %265 : vector<16x8xf32>
    %267 = tpu.concatenate %266, %240 in 1 : vector<16x8xf32>, vector<16x64xf32> -> vector<16x72xf32>
    %cst_105 = arith.constant dense<0.000000e+00> : vector<16x16xf32>
    %268 = tpu.matmul %267, %166, %cst_105 {dimension_numbers = #tpu.dot_dimension_numbers<[1], [0], [0], [1], [0, 0, 1, 1], [], []>} : vector<16x72xf32>, vector<72x16xf32>, vector<16x16xf32> -> vector<16x16xf32>
    %269 = vector.broadcast %157 : vector<1x16xf32> to vector<16x16xf32>
    %270 = arith.addf %268, %269 : vector<16x16xf32>
    %cst_106 = arith.constant 0.000000e+00 : f32
    %271 = vector.broadcast %cst_106 : f32 to vector<16x16xf32>
    %272 = arith.subf %271, %270 : vector<16x16xf32>
    %273 = math.exp %272 : vector<16x16xf32>
    %cst_107 = arith.constant 1.000000e+00 : f32
    %274 = vector.broadcast %cst_107 : f32 to vector<16x16xf32>
    %275 = arith.addf %274, %273 : vector<16x16xf32>
    %276 = tpu.reciprocal %275 {approx = true} : vector<16x16xf32> -> vector<16x16xf32>
    %277 = arith.mulf %270, %276 : vector<16x16xf32>
    %cst_108 = arith.constant dense<0.000000e+00> : vector<16x8xf32>
    %278 = tpu.matmul %277, %168, %cst_108 {dimension_numbers = #tpu.dot_dimension_numbers<[1], [0], [0], [1], [0, 0, 1, 1], [], []>} : vector<16x16xf32>, vector<16x8xf32>, vector<16x8xf32> -> vector<16x8xf32>
    %279 = arith.addf %241, %278 : vector<16x8xf32>
    %280 = vector.broadcast %158 : vector<1x8xf32> to vector<16x8xf32>
    %281 = arith.addf %279, %280 : vector<16x8xf32>
    %282 = tpu.concatenate %239, %281 in 1 : vector<16x3xf32>, vector<16x8xf32> -> vector<16x11xf32>
    %283 = vector.extract_strided_slice %282 {offsets = [0, 3], sizes = [16, 8], strides = [1, 1]} : vector<16x11xf32> to vector<16x8xf32>
    %284 = arith.truncf %283 : vector<16x8xf32> to vector<16x8xbf16>
    %cst_109 = arith.constant dense<0.000000e+00> : vector<2x8xf32>
    %285 = tpu.matmul %9, %284, %cst_109 {dimension_numbers = #tpu.dot_dimension_numbers<[1], [0], [0], [1], [0, 0, 1, 1], [], []>} : vector<2x16xbf16>, vector<16x8xbf16>, vector<2x8xf32> -> vector<2x8xf32>
    %286 = vector.broadcast %16 : vector<2x1xf32> to vector<2x8xf32>
    %287 = arith.mulf %285, %286 : vector<2x8xf32>
    %c0_110 = arith.constant 0 : index
    %c0_111 = arith.constant 0 : index
    %288 = vector.load %arg4[%c0_110, %c0_111] : memref<2x1xf32, #tpu.memory_space<vmem>>, vector<2x1xf32>
    %289 = tpu.concatenate %287, %288 in 1 : vector<2x8xf32>, vector<2x1xf32> -> vector<2x9xf32>
    %c18 = arith.constant 18 : index
    %c0_112 = arith.constant 0 : index
    %290 = vector.load %arg12[%c18, %c0_112] : memref<20x256xf32, #tpu.memory_space<vmem>>, vector<1x128xf32>
    %c19 = arith.constant 19 : index
    %c0_113 = arith.constant 0 : index
    %291 = vector.load %arg12[%c19, %c0_113] : memref<20x256xf32, #tpu.memory_space<vmem>>, vector<1x128xf32>
    %c0_114 = arith.constant 0 : index
    %c0_115 = arith.constant 0 : index
    %292 = vector.load %arg10[%c0_114, %c0_115] : memref<9x128xf32, #tpu.memory_space<vmem>>, vector<9x128xf32>
    %cst_116 = arith.constant dense<0.000000e+00> : vector<2x128xf32>
    %293 = tpu.matmul %289, %292, %cst_116 {dimension_numbers = #tpu.dot_dimension_numbers<[1], [0], [0], [1], [0, 0, 1, 1], [], []>} : vector<2x9xf32>, vector<9x128xf32>, vector<2x128xf32> -> vector<2x128xf32>
    %294 = vector.broadcast %290 : vector<1x128xf32> to vector<2x128xf32>
    %295 = arith.addf %293, %294 : vector<2x128xf32>
    %cst_117 = arith.constant 0.000000e+00 : f32
    %296 = vector.broadcast %cst_117 : f32 to vector<2x128xf32>
    %297 = arith.maximumf %295, %296 : vector<2x128xf32>
    %c0_118 = arith.constant 0 : index
    %c0_119 = arith.constant 0 : index
    %298 = vector.load %arg11[%c0_118, %c0_119] : memref<128x128xf32, #tpu.memory_space<vmem>>, vector<128x128xf32>
    %cst_120 = arith.constant dense<0.000000e+00> : vector<2x128xf32>
    %299 = tpu.matmul %297, %298, %cst_120 {dimension_numbers = #tpu.dot_dimension_numbers<[1], [0], [0], [1], [0, 0, 1, 1], [], []>} : vector<2x128xf32>, vector<128x128xf32>, vector<2x128xf32> -> vector<2x128xf32>
    %300 = vector.broadcast %291 : vector<1x128xf32> to vector<2x128xf32>
    %301 = arith.addf %299, %300 : vector<2x128xf32>
    %c0_121 = arith.constant 0 : index
    %c0_122 = arith.constant 0 : index
    %302 = vector.load %arg13[%c0_121, %c0_122] : memref<2x128xf32, #tpu.memory_space<vmem>>, vector<2x128xf32>
    tpu.vector_store %arg13[%c0_121, %c0_122], %301 {strides = array<i32>} : memref<2x128xf32, #tpu.memory_space<vmem>>, vector<2x128xf32>,
    return
  }
}

</mosaic_0001>

<bundles_post_ra>
// kernel: tpu_custom_call.1
= control target key start
LH: loop header
LB: loop body
LE: loop exit
PB: predicated region body
PF: predicated region fallthrough
CT: control target
= control target key end

     0   :  { %18 = vsyncpa [#allocation3], 0  ;;  %s4233_s0 = inlined_call_operand.hbm [shape: f32[16,11], index: 0, kind: input, shape index: {}]   ;;  %s4234_s1 = inlined_call_operand.vmem [shape: f32[32,4], index: 1, kind: input, shape index: {}]   ;;  %s4235_s2 = inlined_call_operand.vmem [shape: s32[32,2], index: 2, kind: input, shape index: {}]   ;;  %s4236_s3 = inlined_call_operand.vmem [shape: s32[1,16], index: 3, kind: input, shape index: {}]   ;;  %s4237_s4 = inlined_call_operand.vmem [shape: f32[2,1], index: 4, kind: input, shape index: {}]   ;;  %s4238_s5 = inlined_call_operand.vmem [shape: f32[2,21,42], index: 5, kind: input, shape index: {}]   ;;  %s4239_s6 = inlined_call_operand.vmem [shape: f32[2,42,64], index: 6, kind: input, shape index: {}]   ;;  %s4240_s7 = inlined_call_operand.vmem [shape: f32[2,64,256], index: 7, kind: input, shape index: {}]   ;;  %s4241_s8 = inlined_call_operand.vmem [shape: f32[2,72,16], index: 8, kind: input, shape index: {}]   ;;  %s4242_s9 = inlined_call_operand.vmem [shape: f32[2,16,8], index: 9, kind: input, shape index: {}]   ;;  %s4243_s10 = inlined_call_operand.hbm [shape: f32[9,128], index: 10, kind: input, shape index: {}]   ;;  %s4244_s11 = inlined_call_operand.vmem [shape: f32[128,128], index: 11, kind: input, shape index: {}]   ;;  %s4245_s12 = inlined_call_operand.vmem [shape: f32[20,256], index: 12, kind: input, shape index: {}]   ;;  %s4246_s13 = inlined_call_operand.hbm [shape: f32[2,128], index: 13, kind: output, shape index: {}]  }
   0x1   :  { %19 = vsyncpa [#allocation6], 0 }
   0x2   :  { %20 = vsyncpa [#allocation4], 0  ;;  %s3309_s25 = smov [#allocation2]   ;;  %s3237_s29 = scalar_lea.hbm %s4233_s0, 256 }
   0x3   :  { %s26_s26 = sshll.u32 %s3309_s25, 4  ;;  %p3238_p0 = scmp.ne.s32.totalorder %s4233_s0, %s3237_s29  ;;  %s27_s26 = int_to_ptr.vmem [resolvable:$true] %s26_s26 }
   0x4   :  { %p3241_p1 = scmp.lt.u32.totalorder %s3237_s29, %s4233_s0 }
   0x6   :  { %p3243_p2 = pnand %p3241_p1, %p3238_p0 }
   0x8   :  { %3246 = shalt.err (!%p3243_p2)
}
   0x9   :  { %s3247_s17 = scalar_lea.vmem %s27_s26, 256  ;;  %p3252_p4 = scmp.lt.s32.totalorder %s27_s26, %s27_s26 }
   0xa   :  { %p3248_p3 = scmp.ne.s32.totalorder %s27_s26, %s3247_s17  ;;  %p3253_p5 = scmp.lt.s32.totalorder %s3247_s17, %s3247_s17 }
   0xc   :  { %p3254_p6 = por %p3253_p5, %p3252_p4 }
   0xe   :  { %p3255_p7 = pnand %p3254_p6, %p3248_p3 }
  0x10   :  { %3258 = shalt.err (!%p3255_p7)
}
  0x11   :  { %s3310_s18 = smov 128   ;;  %s3311_s19 = smov 8  }
  0x12   :  { %32 = dma.hbm_to_vmem [thread:$0]  %s4233_s0, 256, %s27_s26, [#allocation3], %s3310_s18, %s3310_s18, %s3311_s19  }
  0x13   :  { %s3312_s22 = smov [#allocation5]   ;;  %s3259_s27 = scalar_lea.hbm %s4243_s10, 256 }
  0x14   :  { %s56_s23 = sshll.u32 %s3312_s22, 4  ;;  %p3260_p8 = scmp.ne.s32.totalorder %s4243_s10, %s3259_s27  ;;  %s57_s23 = int_to_ptr.vmem [resolvable:$true] %s56_s23 }
  0x15   :  { %p3263_p9 = scmp.lt.u32.totalorder %s3259_s27, %s4243_s10 }
  0x17   :  { %p3265_p10 = pnand %p3263_p9, %p3260_p8 }
  0x19   :  { %3268 = shalt.err (!%p3265_p10)
}
  0x1a   :  { %s3269_s15 = scalar_lea.vmem %s57_s23, 256  ;;  %p3274_p12 = scmp.lt.s32.totalorder %s57_s23, %s57_s23 }
  0x1b   :  { %p3270_p11 = scmp.ne.s32.totalorder %s57_s23, %s3269_s15  ;;  %p3275_p13 = scmp.lt.s32.totalorder %s3269_s15, %s3269_s15 }
  0x1d   :  { %p3276_p0 = por %p3275_p13, %p3274_p12 }
  0x1f   :  { %p3277_p1 = pnand %p3276_p0, %p3270_p11 }
  0x21   :  { %3280 = shalt.err (!%p3277_p1)
}
  0x22   :  { %62 = dma.hbm_to_vmem [thread:$0]  %s4243_s10, 256, %s57_s23, [#allocation6], %s3310_s18, %s3310_s18, %s3311_s19  }
  0x23   :  { %3303 = dma.done.wait [#allocation3], 256  }
  0x24   :  { %3304 = vsyncadd [#allocation3], 4294967040 }
  0x25   :  { %3305 = dma.done.wait [#allocation6], 256  }
  0x26   :  { %3306 = vsyncadd [#allocation6], 4294967040  ;;  %v3313_v0 = vmov 0   ;;  %v82_v1 = vld [vmem:[%s4235_s2 + $0x10] sm:$0xff]  ;;  %v80_v2 = vld [vmem:[%s4235_s2] sm:$0xff]  ;;  %v3314_v8 = vmov 1   ;;  %v84_v11 = vlaneseq }
  0x27   :  { %3056 = vset.pattern.permute.xlu1 %v3313_v0  ;;  %3055 = vset.pattern.permute.xlu0 %v3313_v0  ;;  %v83_v3 = vld [vmem:[%s4235_s2 + $0x18] sm:$0xff]  ;;  %v81_v4 = vld [vmem:[%s4235_s2 + $0x8] sm:$0xff]  ;;  %v3432_v5 = vld [vmem:[#allocation2] sm:$0xff]  ;;  %s3315_s28 = smov 16   ;;  %vm203_vm4 = vcmask 130048   ;;  %v3316_v17 = vmov 0.0  }
  0x28   :  { %158 = vperm.xlu1 %3056, %v82_v1   ;;  %152 = vperm.xlu0 %3055, %v80_v2   ;;  %v3434_v6 = vld [vmem:[#allocation2 + $0x8] sm:$0xff]  ;;  %v76_v10 = vld [vmem:[%s4234_s1] sm:$0xff]  ;;  %v150_v12 = vand.u32 127, %v84_v11  ;;  %s3317_s29 = smov 5   ;;  %s3318_s30 = smov 125   ;;  %vm322_vm9 = vcmask 23552  }
  0x29   :  { %v148_v7 = vpack.c.bf16 %v3434_v6, %v3432_v5  ;;  %v77_v9 = vld [vmem:[%s4234_s1 + $0x8] sm:$0xff]  ;;  %v112_v54 = vld [vmem:[%s4238_s5] sm:$0xff]  ;;  %v114_v57 = vld [vmem:[%s4238_s5 + $0x10] sm:$0x1f]  ;;  %vm410_vm10 = vcmask 1044480   ;;  %vm383_vm11 = vcmask 64512  }
  0x2a   :  { %v113_v55 = vld [vmem:[%s4238_s5 + $0x8] sm:$0xff]  ;;  %v79_v58 = vld [vmem:[%s4234_s1 + $0x18] sm:$0xff]  ;;  %v78_v59 = vld [vmem:[%s4234_s1 + $0x10] sm:$0xff]  ;;  %vm392_vm12 = vcmask 162816   ;;  %vm397_vm13 = vcmask 171008   ;;  %vm536_vm14 = vcmask 1041408  }
  0x2b   :  { %2700 = vmatprep.subr.bf16.mxu1 %v148_v7  ;;  %v2904_v56 = vpack.c.bf16 %v113_v55, %v112_v54  ;;  %vm3319_vm15 = vmmov 1   ;;  %s3320_s22 = smov 3   ;;  %s3323_s26 = smov [#allocation7]  }
  0x2c   :  { %161 = vperm.xlu1 %3056, %v83_v3   ;;  %155 = vperm.xlu0 %3055, %v81_v4  }
  0x2d   :  { %2701 = vmatpush3.bf16.msra.mxu1 %v148_v7  ;;  %2905 = vmatprep.subr.bf16.mxu0 %v2904_v56 }
  0x2e   :  { %2706 = vmatprep.subr.bf16.mxu1 %v148_v7  ;;  %2907 = vmatpush3.bf16.msra.mxu0 %v2904_v56 }
  0x2f   :  { %2716 = vmatprep.subr.msk.mxu0 %vm410_vm10, %v114_v57 }
  0x30   :  { %3058 = vset.pattern.permute.xlu1 %v3314_v8  ;;  %3057 = vset.pattern.permute.xlu0 %v3314_v8 }
  0x31   :  { %181 = vperm.xlu1 %3058, %v81_v4   ;;  %178 = vperm.xlu0 %3057, %v80_v2  }
  0x32   :  { %2717 = vmatpush3.msk.msra.mxu0 %vm410_vm10, %v114_v57 }
  0x35   :  { %184 = vperm.xlu1 %3058, %v82_v1   ;;  %187 = vperm.xlu0 %3057, %v83_v3  }
  0x39   :  { %3069 = vset.pattern.permute.xlu1 %v3313_v0  ;;  %3070 = vset.pattern.permute.xlu0 %v3313_v0 }
  0x3a   :  { %373 = vrot.lane.b32.xlu0 %v77_v9, %s3315_s28  ;;  %371 = vrot.lane.b32.xlu1 %v76_v10, %s3315_s28 }
  0xa7   :  { %v159_v13 = vpop.permute.xlu1 %158  ;;  %v153_v14 = vpop.permute.xlu0 %152 }
  0xa8   :  { %vm165_vm0 = vcmp.eq.s32.totalorder %v150_v12, %v159_v13  ;;  %vm163_vm1 = vcmp.eq.s32.totalorder %v150_v12, %v153_v14 }
  0xa9   :  { %v2503_v18 = vsel %vm165_vm0, 1.0, %v3316_v17  ;;  %v2501_v19 = vsel %vm163_vm1, 1.0, %v3316_v17  ;;  %vm3566_vm0 = vmpackc.low %vm536_vm14, %vm3319_vm15  ;;  %vm523_vm1 = vcmask 343040   ;;  %vm95_vm14 = vcmask 123904  }
  0xab   :  { %v162_v15 = vpop.permute.xlu1 %161  ;;  %v156_v16 = vpop.permute.xlu0 %155 }
  0xac   :  { %vm166_vm2 = vcmp.eq.s32.totalorder %v150_v12, %v162_v15  ;;  %vm164_vm3 = vcmp.eq.s32.totalorder %v150_v12, %v156_v16 }
  0xad   :  { %v2504_v20 = vsel %vm166_vm2, 1.0, %v3316_v17  ;;  %v2502_v21 = vsel %vm164_vm3, 1.0, %v3316_v17  ;;  %vm660_vm2 = vcmask 523264   ;;  %vm3321_vm3 = vmmov 0  }
  0xae   :  { %v3451_v22 = vpack.c.bf16 %v2504_v20, %v2503_v18  ;;  %v3453_v23 = vpack.c.bf16 %v2502_v21, %v2501_v19 }
  0xb0   :  { %v182_v24 = vpop.permute.xlu1 %181  ;;  %2702 = vmatprep.mubr.msk.bf16.mxu1 %vm203_vm4, %v3453_v23  ;;  %v179_v25 = vpop.permute.xlu0 %178 }
  0xb1   :  { %vm190_vm5 = vcmp.eq.s32.totalorder %v150_v12, %v182_v24  ;;  %vm189_vm6 = vcmp.eq.s32.totalorder %v150_v12, %v179_v25  ;;  %2703 = vmatmul.mubr.msk.bf16.vlgmr.msra.gmra.mrb[0].mxu1 %vm203_vm4, %v3451_v22 }
  0xb2   :  { %v2506_v26 = vsel %vm190_vm5, 1.0, %v3316_v17  ;;  %v2505_v27 = vsel %vm189_vm6, 1.0, %v3316_v17  ;;  %2707 = vmatpush3.bf16.msra.mxu1 %v148_v7  ;;  %vm903_vm5 = vcmask 261120  }
  0xb3   :  { %v3461_v28 = vpack.c.bf16 %v2506_v26, %v2505_v27 }
  0xb4   :  { %v185_v29 = vpop.permute.xlu1 %184  ;;  %v188_v30 = vpop.permute.xlu0 %187 }
  0xb5   :  { %vm191_vm7 = vcmp.eq.s32.totalorder %v150_v12, %v185_v29  ;;  %vm192_vm8 = vcmp.eq.s32.totalorder %v150_v12, %v188_v30  ;;  %2708 = vmatprep.mubr.msk.bf16.mxu1 %vm203_vm4, %v3461_v28 }
  0xb6   :  { %v2507_v31 = vsel %vm191_vm7, 1.0, %v3316_v17  ;;  %v2508_v32 = vsel %vm192_vm8, 1.0, %v3316_v17  ;;  %vm1039_vm8 = vcmask 588800  }
  0xb7   :  { %v3467_v33 = vpack.c.bf16 %v2508_v32, %v2507_v31  ;;  %v115_v31 = vld [vmem:[%s4239_s6] sm:$0xff]  ;;  %v116_v32 = vld [vmem:[%s4239_s6 + $0x8] sm:$0xff] }
  0xb8   :  { %v3518_v60 = vpop.permute.xlu0 %373  ;;  %v3520_v62 = vpop.permute.xlu1 %371 }
  0xb9   :  { %2709 = vmatmul.mubr.msk.bf16.vlgmr.msra.gmra.mrb[4].mxu1 %vm203_vm4, %v3467_v33 }
 0x184   :  { %v2704_v34 = vpop.f32.mrb[0].mxu1 }
 0x185   :  { %359 = vrot.lane.b32.xlu0 %v2704_v34, %s3317_s29  ;;  %v244_v35 = vpop.f32.mrb[1].mxu1 }
 0x186   :  { %355 = vrot.lane.b32.xlu1 %v244_v35, %s3317_s29  ;;  %v2705_v36 = vpop.f32.mrb[2].mxu1 }
 0x187   :  { %v247_v37 = vpop.f32.mrb[3].mxu1 }
 0x189   :  { %361 = vrot.lane.b32.xlu0 %v2705_v36, %s3317_s29 }
 0x18c   :  { %v2710_v38 = vpop.f32.mrb[4].mxu1 }
 0x18d   :  { %v3474_v39 = vsub.f32 %v2704_v34, %v2710_v38  ;;  %357 = vrot.lane.b32.xlu0 %v247_v37, %s3317_s29  ;;  %343 = vrot.lane.b32.xlu1 %v2710_v38, %s3318_s30  ;;  %v299_v40 = vpop.f32.mrb[5].mxu1  ;;  %v2908_v34 = vpack.c.bf16 %v116_v32, %v115_v31  ;;  %v119_v38 = vld [vmem:[%s4239_s6 + $0x20] sm:$0xff]  ;;  %v126_v32 = vld [vmem:[%s4240_s7 + $0x28] sm:$0xff] }
 0x18e   :  { %v3478_v41 = vsub.f32 %v244_v35, %v299_v40  ;;  %v2711_v42 = vpop.f32.mrb[6].mxu1  ;;  %v117_v35 = vld [vmem:[%s4239_s6 + $0x10] sm:$0xff] }
 0x18f   :  { %v3480_v43 = vsub.f32 %v2705_v36, %v2711_v42  ;;  %v302_v44 = vpop.f32.mrb[7].mxu1  ;;  %v320_v46 = vmul.f32 %v3474_v39, %v3474_v39  ;;  %2909 = vmatprep.subr.bf16.mxu1 %v2908_v34  ;;  %v118_v36 = vld [vmem:[%s4239_s6 + $0x18] sm:$0xff] }
 0x190   :  { %v3482_v45 = vsub.f32 %v247_v37, %v302_v44  ;;  %v318_v50 = vmul.f32 %v3478_v41, %v3478_v41  ;;  %2911 = vmatpush3.bf16.msra.mxu1 %v2908_v34  ;;  %v2912_v37 = vpack.c.bf16 %v118_v36, %v117_v35  ;;  %v128_v34 = vld [vmem:[%s4240_s7 + $0x38] sm:$0xff]  ;;  %v125_v36 = vld [vmem:[%s4240_s7 + $0x20] sm:$0xff] }
 0x191   :  { %339 = vrot.lane.b32.xlu0 %v299_v40, %s3318_s30  ;;  %345 = vrot.lane.b32.xlu1 %v2711_v42, %s3318_s30  ;;  %v329_v47 = vsel %vm322_vm9, %v320_v46, 0.0  ;;  %v321_v52 = vmul.f32 %v3480_v43, %v3480_v43  ;;  %v120_v40 = vld [vmem:[%s4239_s6 + $0x28] sm:$0x3]  ;;  %v101_v46 = vld [vmem:[%s4245_s12] ss:$0 sm:$0xff]  ;;  %v2926_v35 = vpack.c.bf16 %v128_v34, %v126_v32 }
 0x192   :  { %v319_v48 = vmul.f32 %v3482_v45, %v3482_v45  ;;  %v323_v51 = vsel %vm322_vm9, %v318_v50, 0.0  ;;  %2913 = vmatprep.subr.bf16.mxu1 %v2912_v37  ;;  %v2916_v42 = vpack.c.bf16 %v120_v40, %v119_v38  ;;  %v130_v40 = vld [vmem:[%s4240_s7 + $0x48] sm:$0xff] }
 0x193   :  { %v332_v53 = vsel %vm322_vm9, %v321_v52, 0.0 }
 0x194   :  { %v326_v49 = vsel %vm322_vm9, %v319_v48, 0.0  ;;  %2915 = vmatpush3.bf16.msra.mxu1 %v2912_v37  ;;  %v127_v37 = vld [vmem:[%s4240_s7 + $0x30] sm:$0xff] }
 0x195   :  { %341 = vrot.lane.b32.xlu1 %v302_v44, %s3318_s30  ;;  %2918 = vmatprep.subr.msk.bf16.mxu1 %vm3566_vm0, %v2916_v42  ;;  %v2928_v38 = vpack.c.bf16 %v127_v37, %v125_v36 }
 0x198   :  { %2921 = vmatpush3.bf16.msk.msra.mxu1 %vm3566_vm0, %v2916_v42  ;;  %v132_v42 = vld [vmem:[%s4240_s7 + $0x58] sm:$0xff] }
 0x199   :  { %2742 = vmatprep.subr.bf16.mxu1 %v3316_v17 }
 0x1b0   :  { %330 = vadd.xlane.f32.xlu0 %v329_v47 }
 0x1b4   :  { %327 = vadd.xlane.f32.xlu0 %v326_v49 }
 0x1b9   :  { %324 = vadd.xlane.f32.xlu1 %v323_v51 }
 0x1bd   :  { %333 = vadd.xlane.f32.xlu1 %v332_v53 }
 0x1ca   :  { %377 = vrot.lane.b32.xlu0 %v79_v58, %s3315_s28 }
 0x1ce   :  { %375 = vrot.lane.b32.xlu1 %v78_v59, %s3315_s28 }
 0x1f7   :  { %v360_v61 = vpop.permute.xlu0 %359 }
 0x1f8   :  { %v356_v0 = vpop.permute.xlu1 %355 }
 0x1fb   :  { %v362_v63 = vpop.permute.xlu0 %361 }
 0x1ff   :  { %v358_v1 = vpop.permute.xlu0 %357  ;;  %v344_v2 = vpop.permute.xlu1 %343 }
 0x200   :  { %v386_v21 = vsel %vm383_vm11, %v344_v2, %v360_v61 }
 0x203   :  { %v340_v3 = vpop.permute.xlu0 %339  ;;  %v346_v4 = vpop.permute.xlu1 %345 }
 0x204   :  { %v384_v9 = vsel %vm383_vm11, %v340_v3, %v356_v0  ;;  %v387_v25 = vsel %vm383_vm11, %v346_v4, %v362_v63 }
 0x205   :  { %v388_v14 = vsel %vm203_vm4, %v384_v9, %v3520_v62 }
 0x207   :  { %v342_v8 = vpop.permute.xlu1 %341 }
 0x208   :  { %v385_v10 = vsel %vm383_vm11, %v342_v8, %v358_v1 }
 0x209   :  { %v389_v15 = vsel %vm203_vm4, %v385_v10, %v3518_v60 }
 0x23d   :  { %v331_v7 = vpop.xlane.xlu0 %330 }
 0x241   :  { %v328_v12 = vpop.xlane.xlu0 %327 }
 0x242   :  { %v394_v18 = vsel %vm392_vm12, %v389_v15, %v328_v12 }
 0x245   :  { %v3532_v20 = vpop.permute.xlu0 %377 }
 0x246   :  { %v325_v13 = vpop.xlane.xlu1 %324  ;;  %v391_v27 = vsel %vm203_vm4, %v387_v25, %v3532_v20  ;;  %v122_v25 = vld [vmem:[%s4240_s7 + $0x8] sm:$0xff] }
 0x247   :  { %v393_v16 = vsel %vm392_vm12, %v388_v14, %v325_v13 }
 0x248   :  { %2718 = vmatprep.mubr.msk.f32.mxu0 %vm397_vm13, %v393_v16 }
 0x249   :  { %2719 = vmatmul.mubr.msk.f32.vlgmr.msra.gmra.mrb[0].mxu0 %vm397_vm13, %v394_v18 }
 0x24a   :  { %v334_v19 = vpop.xlane.xlu1 %333 }
 0x24b   :  { %v396_v30 = vsel %vm392_vm12, %v391_v27, %v334_v19 }
 0x24e   :  { %v3535_v24 = vpop.permute.xlu1 %375 }
 0x24f   :  { %v390_v26 = vsel %vm203_vm4, %v386_v21, %v3535_v24 }
 0x250   :  { %v395_v29 = vsel %vm392_vm12, %v390_v26, %v331_v7  ;;  %v124_v26 = vld [vmem:[%s4240_s7 + $0x18] sm:$0xff] }
 0x251   :  { %2721 = vmatprep.mubr.msk.f32.mxu0 %vm397_vm13, %v395_v29  ;;  %v2922_v27 = vpack.c.bf16 %v124_v26, %v122_v25  ;;  %v121_v29 = vld [vmem:[%s4240_s7] sm:$0xff] }
 0x252   :  { %2722 = vmatmul.mubr.msk.f32.gmra.mrb[2].mxu0 %vm397_vm13, %v396_v30  ;;  %v123_v30 = vld [vmem:[%s4240_s7 + $0x10] sm:$0xff] }
 0x253   :  { %737 = vmatprep.mubr.f32.mxu0 %v3316_v17  ;;  %v2924_v31 = vpack.c.bf16 %v123_v30, %v121_v29  ;;  %2923 = vmatprep.subr.bf16.mxu0 %v2922_v27 }
 0x255   :  { %2925 = vmatpush1.bf16.msra.mxu0 %v2924_v31 }
 0x256   :  { %2927 = vmatprep.subr.bf16.mxu0 %v2926_v35 }
 0x259   :  { %2929 = vmatpush1.bf16.msra.mxu0 %v2928_v38 }
 0x31c   :  { %v2720_v47 = vpop.f32.mrb[0].mxu0 }
 0x31d   :  { %v486_v48 = vadd.f32 %v2720_v47, %v101_v46  ;;  %v480_v49 = vpop.f32.mrb[1].mxu0  ;;  %v129_v47 = vld [vmem:[%s4240_s7 + $0x40] sm:$0xff] }
 0x31e   :  { %v481_v50 = vadd.f32 %v480_v49, %v101_v46 }
 0x31f   :  { %v500_v51 = vsub.f32 0.0, %v486_v48 }
 0x320   :  { %v499_v52 = vsub.f32 0.0, %v481_v50 }
 0x321   :  { %v505_v53 = vmul.f32 1.442695, %v500_v51  ;;  %v136_v51 = vld [vmem:[%s4240_s7 + $0x78] sm:$0xff] }
 0x322   :  { %v503_v54 = vmul.f32 1.442695, %v499_v52 }
 0x323   :  { %3081 = vpow2.f32 %v505_v53  ;;  %v133_v53 = vld [vmem:[%s4240_s7 + $0x60] sm:$0xff] }
 0x324   :  { %3083 = vpow2.f32 %v503_v54  ;;  %v135_v54 = vld [vmem:[%s4240_s7 + $0x70] sm:$0xff] }
 0x325   :  { %v2723_v55 = vpop.f32.mrb[2].mxu0 }
 0x326   :  { %v496_v56 = vadd.f32 %v2723_v55, %v101_v46  ;;  %v490_v57 = vpop.f32.mrb[3].mxu0  ;;  %v2936_v55 = vpack.c.bf16 %v135_v54, %v133_v53 }
 0x327   :  { %v491_v58 = vadd.f32 %v490_v57, %v101_v46  ;;  %v2930_v46 = vpack.c.bf16 %v132_v42, %v130_v40  ;;  %v3657_v40 = vshrl.u32 %v84_v11, 7 }
 0x328   :  { %v502_v59 = vsub.f32 0.0, %v496_v56 }
 0x329   :  { %v501_v61 = vsub.f32 0.0, %v491_v58  ;;  %2931 = vmatprep.subr.bf16.mxu0 %v2930_v46  ;;  %v3660_v42 = vsub.s32 0, %v3657_v40  ;;  %v2499_v46 = vld [vmem:[%s4245_s12 + $0x2] ss:$8 sm:$0x3] }
 0x32a   :  { %v509_v63 = vmul.f32 1.442695, %v502_v59 }
 0x32b   :  { %v507_v0 = vmul.f32 1.442695, %v501_v61 }
 0x32c   :  { %3085 = vpow2.f32 %v509_v63 }
 0x32d   :  { %v3082_v1 = vpop.eup %3081  ;;  %3087 = vpow2.f32 %v507_v0 }
 0x32e   :  { %v3084_v2 = vpop.eup %3083  ;;  %v512_v3 = vadd.f32 1.0, %v3082_v1 }
 0x32f   :  { %v511_v4 = vadd.f32 1.0, %v3084_v2 }
 0x330   :  { %3089 = vrcp.f32 %v512_v3 }
 0x331   :  { %3091 = vrcp.f32 %v511_v4 }
 0x336   :  { %v3086_v7 = vpop.eup %3085 }
 0x337   :  { %v3088_v8 = vpop.eup %3087  ;;  %v514_v9 = vadd.f32 1.0, %v3086_v7 }
 0x338   :  { %v513_v10 = vadd.f32 1.0, %v3088_v8 }
 0x339   :  { %3093 = vrcp.f32 %v514_v9 }
 0x33a   :  { %v3090_v12 = vpop.eup %3089  ;;  %3095 = vrcp.f32 %v513_v10 }
 0x33b   :  { %v3092_v13 = vpop.eup %3091  ;;  %v520_v15 = vmul.f32 %v3090_v12, %v486_v48  ;;  %v131_v48 = vld [vmem:[%s4240_s7 + $0x50] sm:$0xff] }
 0x33c   :  { %v519_v14 = vmul.f32 %v3092_v13, %v481_v50  ;;  %v2932_v49 = vpack.c.bf16 %v131_v48, %v129_v47  ;;  %v134_v50 = vld [vmem:[%s4240_s7 + $0x68] sm:$0xff]  ;;  %v3666_v47 = vsub.s32 1, %v3657_v40  ;;  %v653_v48 = vrot.slane %v2499_v46, %v3660_v42 }
 0x33d   :  { %v2934_v52 = vpack.c.bf16 %v136_v51, %v134_v50 }
 0x33e   :  { %2736 = vmatprep.mubr.msk.f32.mxu1 %vm523_vm1, %v519_v14  ;;  %2933 = vmatpush1.bf16.msra.mxu0 %v2932_v49  ;;  %v657_v49 = vrot.slane %v2499_v46, %v3666_v47 }
 0x33f   :  { %2737 = vmatmul.mubr.msk.f32.vlgmr.msra.gmra.mrb[8].mxu1 %vm523_vm1, %v520_v15  ;;  %2935 = vmatprep.subr.bf16.mxu0 %v2934_v52 }
 0x342   :  { %2937 = vmatpush1.bf16.msra.mxu0 %v2936_v55 }
 0x343   :  { %v3094_v16 = vpop.eup %3093 }
 0x344   :  { %v3096_v18 = vpop.eup %3095  ;;  %v522_v21 = vmul.f32 %v3094_v16, %v496_v56  ;;  %v102_v56 = vld [vmem:[%s4245_s12 + $0x1] ss:$0 sm:$0xff] }
 0x345   :  { %v521_v19 = vmul.f32 %v3096_v18, %v491_v58 }
 0x347   :  { %2739 = vmatprep.mubr.msk.f32.mxu1 %vm523_vm1, %v521_v19 }
 0x348   :  { %2740 = vmatmul.mubr.msk.f32.gmra.mrb[10].mxu1 %vm523_vm1, %v522_v21 }
 0x349   :  { %2746 = vmatprep.mubr.msk.bf16.mxu1 %vm3321_vm3, %v3316_v17 }
 0x412   :  { %v2738_v57 = vpop.f32.mrb[8].mxu1 }
 0x413   :  { %v612_v58 = vadd.f32 %v2738_v57, %v102_v56  ;;  %v606_v59 = vpop.f32.mrb[9].mxu1 }
 0x414   :  { %v607_v61 = vadd.f32 %v606_v59, %v102_v56 }
 0x415   :  { %v626_v63 = vsub.f32 0.0, %v612_v58 }
 0x416   :  { %v625_v0 = vsub.f32 0.0, %v607_v61 }
 0x417   :  { %v631_v1 = vmul.f32 1.442695, %v626_v63 }
 0x418   :  { %v629_v2 = vmul.f32 1.442695, %v625_v0 }
 0x419   :  { %3097 = vpow2.f32 %v631_v1 }
 0x41a   :  { %3099 = vpow2.f32 %v629_v2 }
 0x41b   :  { %v2741_v3 = vpop.f32.mrb[10].mxu1 }
 0x41c   :  { %v622_v4 = vadd.f32 %v2741_v3, %v102_v56  ;;  %v616_v7 = vpop.f32.mrb[11].mxu1 }
 0x41d   :  { %v617_v8 = vadd.f32 %v616_v7, %v102_v56 }
 0x41e   :  { %v628_v9 = vsub.f32 0.0, %v622_v4 }
 0x41f   :  { %v627_v10 = vsub.f32 0.0, %v617_v8 }
 0x420   :  { %v635_v12 = vmul.f32 1.442695, %v628_v9 }
 0x421   :  { %v633_v13 = vmul.f32 1.442695, %v627_v10 }
 0x422   :  { %3101 = vpow2.f32 %v635_v12 }
 0x423   :  { %v3098_v14 = vpop.eup %3097  ;;  %3103 = vpow2.f32 %v633_v13 }
 0x424   :  { %v3100_v15 = vpop.eup %3099  ;;  %v638_v16 = vadd.f32 1.0, %v3098_v14 }
 0x425   :  { %v637_v18 = vadd.f32 1.0, %v3100_v15 }
 0x426   :  { %3105 = vrcp.f32 %v638_v16 }
 0x427   :  { %3107 = vrcp.f32 %v637_v18 }
 0x42c   :  { %v3102_v19 = vpop.eup %3101 }
 0x42d   :  { %v3104_v21 = vpop.eup %3103  ;;  %v640_v25 = vadd.f32 1.0, %v3102_v19 }
 0x42e   :  { %v639_v26 = vadd.f32 1.0, %v3104_v21 }
 0x42f   :  { %3109 = vrcp.f32 %v640_v25 }
 0x430   :  { %v3106_v27 = vpop.eup %3105  ;;  %3111 = vrcp.f32 %v639_v26 }
 0x431   :  { %v3108_v29 = vpop.eup %3107  ;;  %v3633_v30 = vmul.f32 %v3106_v27, %v612_v58 }
 0x432   :  { %v3635_v31 = vmul.f32 %v3108_v29, %v607_v61 }
 0x434   :  { %2523 = vmatmul.mubr.msk.f32.vlgmr.msra.gmra.mrb[4].mxu0 %vm660_vm2, %v3635_v31  ;;  %v3059_v32 = vpack.i.bf16 %v3633_v30, %v3635_v31 }
 0x435   :  { %743 = vmatprep.mubr.f32.mxu0 %v3316_v17 }
 0x438   :  { %2524 = vmatmul.mubr.msk.f32.gmra.mrb[6].mxu0 %vm660_vm2, %v3633_v30 }
 0x439   :  { %v3110_v34 = vpop.eup %3109  ;;  %749 = vmatprep.mubr.f32.mxu0 %v3316_v17 }
 0x43a   :  { %v3112_v35 = vpop.eup %3111  ;;  %v3645_v36 = vmul.f32 %v3110_v34, %v622_v4 }
 0x43b   :  { %v3647_v37 = vmul.f32 %v3112_v35, %v617_v8 }
 0x43d   :  { %2525 = vmatmul.mubr.msk.f32.gmra.mrb[8].mxu0 %vm660_vm2, %v3647_v37  ;;  %v3064_v38 = vpack.i.bf16 %v3645_v36, %v3647_v37 }
 0x43e   :  { %755 = vmatprep.mubr.f32.mxu0 %v3316_v17 }
 0x441   :  { %2526 = vmatmul.mubr.msk.f32.gmra.mrb[10].mxu0 %vm660_vm2, %v3645_v36 }
 0x507   :  { %v739_v50 = vpop.f32.mrb[4].mxu0 }
 0x508   :  { %v740_v51 = vadd.f32 %v739_v50, %v653_v48  ;;  %v741_v52 = vpop.f32.mrb[5].mxu0 }
 0x509   :  { %v742_v53 = vadd.f32 %v741_v52, %v657_v49 }
 0x50a   :  { %v762_v11 = vsub.f32 0.0, %v740_v51 }
 0x50b   :  { %v763_v54 = vsub.f32 0.0, %v742_v53  ;;  %v745_v55 = vpop.f32.mrb[6].mxu0 }
 0x50c   :  { %v770_v56 = vmul.f32 1.442695, %v762_v11  ;;  %v3670_v57 = vadd.f32 %v745_v55, %v653_v48  ;;  %v747_v58 = vpop.f32.mrb[7].mxu0  ;;  %v2500_v11 = vld [vmem:[%s4245_s12 + $0x3] ss:$8 sm:$0x3] }
 0x50d   :  { %v772_v59 = vmul.f32 1.442695, %v763_v54  ;;  %v3672_v61 = vadd.f32 %v747_v58, %v657_v49  ;;  %v814_v58 = vrot.slane %v2500_v11, %v3660_v42 }
 0x50e   :  { %3113 = vpow2.f32 %v770_v56  ;;  %v764_v63 = vsub.f32 0.0, %v3670_v57 }
 0x50f   :  { %3115 = vpow2.f32 %v772_v59  ;;  %v765_v0 = vsub.f32 0.0, %v3672_v61 }
 0x510   :  { %v774_v1 = vmul.f32 1.442695, %v764_v63  ;;  %v751_v2 = vpop.f32.mrb[8].mxu0  ;;  %v818_v63 = vrot.slane %v2500_v11, %v3666_v47 }
 0x511   :  { %v776_v3 = vmul.f32 1.442695, %v765_v0  ;;  %v3676_v4 = vadd.f32 %v751_v2, %v653_v48  ;;  %v753_v7 = vpop.f32.mrb[9].mxu0 }
 0x512   :  { %3117 = vpow2.f32 %v774_v1  ;;  %v3678_v8 = vadd.f32 %v753_v7, %v657_v49 }
 0x513   :  { %3119 = vpow2.f32 %v776_v3  ;;  %v766_v9 = vsub.f32 0.0, %v3676_v4 }
 0x514   :  { %v767_v10 = vsub.f32 0.0, %v3678_v8  ;;  %v757_v12 = vpop.f32.mrb[10].mxu0 }
 0x515   :  { %v778_v13 = vmul.f32 1.442695, %v766_v9  ;;  %v3682_v14 = vadd.f32 %v757_v12, %v653_v48  ;;  %v759_v15 = vpop.f32.mrb[11].mxu0 }
 0x516   :  { %v780_v16 = vmul.f32 1.442695, %v767_v10  ;;  %v760_v18 = vadd.f32 %v759_v15, %v657_v49 }
 0x517   :  { %3121 = vpow2.f32 %v778_v13  ;;  %v768_v19 = vsub.f32 0.0, %v3682_v14 }
 0x518   :  { %v3114_v21 = vpop.eup %3113  ;;  %3123 = vpow2.f32 %v780_v16  ;;  %v769_v25 = vsub.f32 0.0, %v760_v18 }
 0x519   :  { %v3116_v26 = vpop.eup %3115  ;;  %v786_v27 = vadd.f32 1.0, %v3114_v21  ;;  %v782_v29 = vmul.f32 1.442695, %v768_v19 }
 0x51a   :  { %v787_v34 = vadd.f32 1.0, %v3116_v26  ;;  %v784_v35 = vmul.f32 1.442695, %v769_v25 }
 0x51b   :  { %3125 = vrcp.f32 %v786_v27 }
 0x51c   :  { %v3118_v46 = vpop.eup %3117  ;;  %3127 = vrcp.f32 %v787_v34 }
 0x51d   :  { %v3120_v50 = vpop.eup %3119  ;;  %v788_v48 = vadd.f32 1.0, %v3118_v46  ;;  %3129 = vpow2.f32 %v782_v29 }
 0x51e   :  { %v789_v52 = vadd.f32 1.0, %v3120_v50  ;;  %3131 = vpow2.f32 %v784_v35 }
 0x51f   :  { %3133 = vrcp.f32 %v788_v48 }
 0x520   :  { %3135 = vrcp.f32 %v789_v52 }
 0x521   :  { %v3122_v49 = vpop.eup %3121 }
 0x522   :  { %v3124_v54 = vpop.eup %3123  ;;  %v790_v55 = vadd.f32 1.0, %v3122_v49 }
 0x523   :  { %v791_v56 = vadd.f32 1.0, %v3124_v54 }
 0x524   :  { %3137 = vrcp.f32 %v790_v55 }
 0x525   :  { %v3126_v59 = vpop.eup %3125  ;;  %3139 = vrcp.f32 %v791_v56 }
 0x526   :  { %v3128_v0 = vpop.eup %3127  ;;  %v802_v1 = vmul.f32 %v3126_v59, %v740_v51 }
 0x527   :  { %v3130_v2 = vpop.eup %3129  ;;  %v803_v3 = vmul.f32 %v3128_v0, %v742_v53 }
 0x528   :  { %v3132_v7 = vpop.eup %3131  ;;  %v792_v9 = vadd.f32 1.0, %v3130_v2  ;;  %v821_v10 = vmul.f32 %v814_v58, %v802_v1 }
 0x529   :  { %v3134_v12 = vpop.eup %3133  ;;  %v793_v13 = vadd.f32 1.0, %v3132_v7  ;;  %v822_v15 = vmul.f32 %v818_v63, %v803_v3 }
 0x52a   :  { %v3136_v16 = vpop.eup %3135  ;;  %v804_v19 = vmul.f32 %v3134_v12, %v3670_v57  ;;  %3141 = vrcp.f32 %v792_v9 }
 0x52b   :  { %v805_v21 = vmul.f32 %v3136_v16, %v3672_v61  ;;  %3143 = vrcp.f32 %v793_v13  ;;  %v829_v25 = vadd.f32 %v822_v15, %v821_v10 }
 0x52c   :  { %v823_v26 = vmul.f32 %v814_v58, %v804_v19 }
 0x52d   :  { %830 = vadd.xlane.f32.xlu1 %v829_v25  ;;  %v824_v27 = vmul.f32 %v818_v63, %v805_v21 }
 0x52e   :  { %v3138_v51 = vpop.eup %3137 }
 0x52f   :  { %v3140_v29 = vpop.eup %3139  ;;  %v806_v53 = vmul.f32 %v3138_v51, %v3676_v4  ;;  %v832_v34 = vadd.f32 %v824_v27, %v823_v26  ;;  %v107_v4 = vld [vmem:[%s4245_s12 + $0x4] ss:$0 sm:$0xff] }
 0x530   :  { %v807_v35 = vmul.f32 %v3140_v29, %v3678_v8 }
 0x531   :  { %833 = vadd.xlane.f32.xlu0 %v832_v34  ;;  %v825_v46 = vmul.f32 %v814_v58, %v806_v53 }
 0x532   :  { %v826_v50 = vmul.f32 %v818_v63, %v807_v35 }
 0x534   :  { %v3142_v48 = vpop.eup %3141  ;;  %v835_v57 = vadd.f32 %v826_v50, %v825_v46 }
 0x535   :  { %v3144_v52 = vpop.eup %3143  ;;  %v808_v61 = vmul.f32 %v3142_v48, %v3682_v14 }
 0x536   :  { %v809_v49 = vmul.f32 %v3144_v52, %v760_v18  ;;  %836 = vadd.xlane.f32.xlu0 %v835_v57 }
 0x537   :  { %v827_v11 = vmul.f32 %v814_v58, %v808_v61 }
 0x538   :  { %v828_v54 = vmul.f32 %v818_v63, %v809_v49 }
 0x53a   :  { %v838_v55 = vadd.f32 %v828_v54, %v827_v11 }
 0x53c   :  { %839 = vadd.xlane.f32.xlu1 %v838_v55 }
 0x54c   :  { %952 = vrot.lane.b32.xlu0 %v3432_v5, %s3318_s30 }
 0x54d   :  { %954 = vrot.lane.b32.xlu1 %v3434_v6, %s3318_s30 }
 0x550   :  { %3060 = vrot.lane.b32.xlu0 %v3059_v32, %s3320_s22 }
 0x551   :  { %3065 = vrot.lane.b32.xlu1 %v3064_v38, %s3320_s22 }
 0x5ba   :  { %v831_v8 = vpop.xlane.xlu1 %830 }
 0x5bb   :  { %v841_v14 = vadd.f32 %v831_v8, %v107_v4 }
 0x5bd   :  { %847 = vperm.xlu1 %3069, %v841_v14   ;;  %v108_v14 = vld [vmem:[%s4245_s12 + $0x5] ss:$0 sm:$0xff] }
 0x5be   :  { %v834_v18 = vpop.xlane.xlu0 %833 }
 0x5bf   :  { %v842_v56 = vadd.f32 %v834_v18, %v107_v4 }
 0x5c1   :  { %852 = vperm.xlu0 %3070, %v842_v56  }
 0x5c3   :  { %v837_v58 = vpop.xlane.xlu0 %836 }
 0x5c4   :  { %v843_v59 = vadd.f32 %v837_v58, %v107_v4 }
 0x5c6   :  { %857 = vperm.xlu1 %3069, %v843_v59  }
 0x5c7   :  { %v953_v32 = vpop.permute.xlu0 %952 }
 0x5c8   :  { %v958_v36 = vsel %vm383_vm11, %v953_v32, 0.0  ;;  %v139_v32 = vld [vmem:[%s4241_s8 + $0x10] sm:$0xff] }
 0x5c9   :  { %v840_v30 = vpop.xlane.xlu1 %839 }
 0x5ca   :  { %v844_v31 = vadd.f32 %v840_v30, %v107_v4  ;;  %v137_v30 = vld [vmem:[%s4241_s8] sm:$0xff] }
 0x5cb   :  { %v3061_v0 = vpop.permute.xlu0 %3060 }
 0x5cc   :  { %862 = vperm.xlu1 %3069, %v844_v31   ;;  %v3063_v7 = vunpack.i.h.bf16 %v3061_v0  ;;  %v3062_v9 = vunpack.i.l.bf16 %v3061_v0  ;;  %v138_v31 = vld [vmem:[%s4241_s8 + $0x8] sm:$0xff] }
 0x5cd   :  { %v955_v37 = vpop.permute.xlu1 %954 }
 0x5ce   :  { %v961_v38 = vsel %vm383_vm11, %v955_v37, 0.0  ;;  %v140_v37 = vld [vmem:[%s4241_s8 + $0x18] sm:$0xff] }
 0x5d1   :  { %v3066_v63 = vpop.permute.xlu1 %3065 }
 0x5d2   :  { %v3068_v25 = vunpack.i.h.bf16 %v3066_v63  ;;  %v3067_v26 = vunpack.i.l.bf16 %v3066_v63 }
 0x5e0   :  { %959 = vadd.xlane.f32.xlu0 %v958_v36  ;;  %v2938_v36 = vpack.c.bf16 %v138_v31, %v137_v30 }
 0x5f0   :  { %962 = vadd.xlane.f32.xlu1 %v961_v38  ;;  %v2942_v38 = vpack.c.bf16 %v140_v37, %v139_v32 }
 0x60d   :  { %887 = vxpose.xlu0.c.b16.start [1/2] (short) (narrow) %v3461_v28, 16 }
 0x611   :  { %888 = vxpose.xlu0.c.b16.end [2/2] (short) (narrow) %v3467_v33, 16 }
 0x63c   :  { %v848_v1 = vpop.permute.xlu1 %847 }
 0x63d   :  { %v865_v2 = vmul.f32 %v848_v1, %v3478_v41 }
 0x63f   :  { %v881_v12 = vsel %vm322_vm9, %v865_v2, %v3062_v9 }
 0x640   :  { %v853_v3 = vpop.permute.xlu0 %852 }
 0x641   :  { %v866_v10 = vmul.f32 %v853_v3, %v3482_v45 }
 0x643   :  { %v882_v13 = vsel %vm322_vm9, %v866_v10, %v3063_v7 }
 0x644   :  { %v885_v15 = vpack.c.bf16 %v882_v13, %v881_v12 }
 0x645   :  { %v858_v16 = vpop.permute.xlu1 %857 }
 0x646   :  { %2743 = vmatpush3.bf16.msra.mxu1 %v885_v15  ;;  %v867_v19 = vmul.f32 %v858_v16, %v3474_v39 }
 0x647   :  { %2744 = vmatprep.subr.bf16.mxu1 %v3316_v17 }
 0x648   :  { %v883_v27 = vsel %vm322_vm9, %v867_v19, %v3067_v26 }
 0x64b   :  { %v863_v21 = vpop.permute.xlu1 %862 }
 0x64c   :  { %v868_v41 = vmul.f32 %v863_v21, %v3480_v43 }
 0x64e   :  { %v884_v45 = vsel %vm322_vm9, %v868_v41, %v3068_v25  ;;  %v141_v41 = vld [vmem:[%s4241_s8 + $0x20] sm:$0xff] }
 0x64f   :  { %v886_v51 = vpack.c.bf16 %v884_v45, %v883_v27  ;;  %v142_v27 = vld [vmem:[%s4241_s8 + $0x28] sm:$0xff] }
 0x650   :  { %v2946_v45 = vpack.c.bf16 %v142_v27, %v141_v41  ;;  %v3236_v41 = vld [vmem:[#allocation2] sm:$0xff] }
 0x651   :  { %2745 = vmatpush3.bf16.msra.mxu1 %v886_v51  ;;  %v143_v51 = vld [vmem:[%s4241_s8 + $0x30] sm:$0xff] }
 0x652   :  { %2939 = vmatprep.subr.bf16.mxu1 %v2938_v36 }
 0x66d   :  { %v960_v29 = vpop.xlane.xlu0 %959 }
 0x673   :  { %v3725_v53 = vpop.trf.xlu0 }
 0x674   :  { %2747 = vmatmul.mubr.msk.bf16.vlgmr.msra.gmra.mrb[12].mxu1 %vm903_vm5, %v3725_v53 }
 0x675   :  { %2941 = vmatpush3.bf16.msra.mxu1 %v2938_v36 }
 0x676   :  { %2943 = vmatprep.subr.bf16.mxu1 %v2942_v38 }
 0x679   :  { %2945 = vmatpush3.bf16.msra.mxu1 %v2942_v38 }
 0x67a   :  { %2947 = vmatprep.subr.bf16.mxu1 %v2946_v45 }
 0x67d   :  { %v963_v34 = vpop.xlane.xlu1 %962  ;;  %2949 = vmatpush3.bf16.msra.mxu1 %v2946_v45 }
 0x67e   :  { %v964_v39 = vadd.f32 %v963_v34, %v960_v29  ;;  %v144_v29 = vld [vmem:[%s4241_s8 + $0x38] sm:$0xff] }
 0x67f   :  { %v2950_v34 = vpack.c.bf16 %v144_v29, %v143_v51 }
 0x680   :  { %v965_v35 = vrot.slane %v964_v39, 4 }
 0x681   :  { %2951 = vmatprep.subr.bf16.mxu1 %v2950_v34 }
 0x682   :  { %v966_v46 = vadd.f32 %v965_v35, %v964_v39  ;;  %2953 = vmatpush3.bf16.msra.mxu1 %v2950_v34  ;;  %v145_v39 = vld [vmem:[%s4241_s8 + $0x40] sm:$0xff] }
 0x683   :  { %2766 = vmatprep.subr.mxu1 %v145_v39 }
 0x684   :  { %v967_v50 = vrot.slane %v966_v46, 2 }
 0x686   :  { %v968_v48 = vadd.f32 %v967_v50, %v966_v46  ;;  %2767 = vmatpush3.msra.mxu1 %v145_v39 }
 0x688   :  { %v969_v43 = vrot.slane %v968_v48, 1 }
 0x68a   :  { %v970_v57 = vadd.f32 %v969_v43, %v968_v48 }
 0x68c   :  { %v971_v52 = vmul.f32 0.0078125, %v970_v57 }
 0x68e   :  { %v3730_v61 = vsub.f32 %v3432_v5, %v971_v52  ;;  %v3735_v11 = vsub.f32 %v3434_v6, %v971_v52  ;;  %v109_v6 = vld [vmem:[%s4245_s12 + $0x6] ss:$0 sm:$0xff] }
 0x690   :  { %v974_v49 = vmul.f32 %v3730_v61, %v3730_v61  ;;  %v975_v54 = vmul.f32 %v3735_v11, %v3735_v11 }
 0x692   :  { %978 = vrot.lane.b32.xlu1 %v974_v49, %s3318_s30 }
 0x696   :  { %980 = vrot.lane.b32.xlu1 %v975_v54, %s3318_s30 }
 0x704   :  { %v979_v55 = vpop.permute.xlu1 %978 }
 0x705   :  { %v984_v4 = vsel %vm383_vm11, %v979_v55, 0.0 }
 0x706   :  { %985 = vadd.xlane.f32.xlu1 %v984_v4 }
 0x708   :  { %v981_v8 = vpop.permute.xlu1 %980 }
 0x709   :  { %v987_v5 = vsel %vm383_vm11, %v981_v8, 0.0 }
 0x70a   :  { %988 = vadd.xlane.f32.xlu0 %v987_v5 }
 0x717   :  { %1016 = vrot.lane.b32.xlu1 %v109_v6, %s3320_s22  ;;  %v146_v6 = vld [vmem:[%s4242_s9] sm:$0xff] }
 0x720   :  { %1010 = vrot.lane.b32.xlu0 %v108_v14, %s3320_s22  ;;  %v147_v14 = vld [vmem:[%s4242_s9 + $0x8] sm:$0xff] }
 0x747   :  { %v3751_v18 = vpop.f32.mrb[12].mxu1 }
 0x748   :  { %v2748_v56 = vpop.f32.mrb[13].mxu1 }
 0x749   :  { %v3753_v58 = vpop.f32.mrb[14].mxu1  ;;  %v2954_v56 = vpack.c.bf16 %v147_v14, %v146_v6 }
 0x74a   :  { %v2749_v59 = vpop.f32.mrb[15].mxu1 }
 0x74b   :  { %2955 = vmatprep.subr.bf16.mxu0 %v2954_v56  ;;  %v110_v59 = vld [vmem:[%s4245_s12 + $0x7] ss:$0 sm:$0xff] }
 0x74c   :  { %2957 = vmatpush3.bf16.msra.mxu0 %v2954_v56 }
 0x793   :  { %v986_v63 = vpop.xlane.xlu1 %985 }
 0x797   :  { %v989_v0 = vpop.xlane.xlu0 %988  ;;  %v1017_v43 = vpop.permute.xlu1 %1016 }
 0x798   :  { %v990_v1 = vadd.f32 %v989_v0, %v986_v63 }
 0x79a   :  { %v991_v2 = vrot.slane %v990_v1, 4 }
 0x79b   :  { %v1011_v46 = vpop.permute.xlu0 %1010 }
 0x79c   :  { %v992_v3 = vadd.f32 %v991_v2, %v990_v1 }
 0x79e   :  { %v993_v7 = vrot.slane %v992_v3, 2 }
 0x7a0   :  { %v994_v9 = vadd.f32 %v993_v7, %v992_v3 }
 0x7a2   :  { %v995_v10 = vrot.slane %v994_v9, 1 }
 0x7a4   :  { %v996_v12 = vadd.f32 %v995_v10, %v994_v9 }
 0x7a6   :  { %v997_v13 = vmul.f32 0.0078125, %v996_v12 }
 0x7a8   :  { %3145 = vrsqrt.f32 %v997_v13  ;;  %vm1000_vm6 = vcmp.eq.f32.partialorder %v997_v13, inf  ;;  %v1003_v19 = vand.u32 2147483648, %v997_v13  ;;  %vm1002_vm7 = vcmp.eq.f32.partialorder %v997_v13, 0.0 }
 0x7b2   :  { %v3146_v15 = vpop.eup %3145 }
 0x7b3   :  { %v999_v16 = vmul.f32 %v3146_v15, %v997_v13 }
 0x7b5   :  { %v1001_v21 = vsel %vm1000_vm6, %v997_v13, %v999_v16  ;;  %v111_v16 = vld [vmem:[%s4245_s12 + $0x10] ss:$0 sm:$0xff] }
 0x7b6   :  { %v1004_v25 = vsel %vm1002_vm7, %v1003_v19, %v1001_v21 }
 0x7b7   :  { %v1005_v26 = vadd.f32 1e-05, %v1004_v25  ;;  %v3235_v25 = vld [vmem:[#allocation2 + $0x8] sm:$0xff] }
 0x7b8   :  { %v949_v51 = vadd.f32 %v3235_v25, %v3753_v58 }
 0x7b9   :  { %3147 = vrcp.f32 %v1005_v26 }
 0x7c3   :  { %v3148_v35 = vpop.eup %3147 }
 0x7c4   :  { %v1007_v50 = vmul.f32 %v3148_v35, %v3730_v61  ;;  %v1008_v48 = vmul.f32 %v3148_v35, %v3735_v11 }
 0x7c6   :  { %v1013_v57 = vmul.f32 %v1011_v46, %v1007_v50  ;;  %v1014_v52 = vmul.f32 %v1011_v46, %v1008_v48 }
 0x7c8   :  { %v1019_v49 = vadd.f32 %v1017_v43, %v1013_v57  ;;  %v1020_v54 = vadd.f32 %v1017_v43, %v1014_v52 }
 0x7ca   :  { %1025 = vrot.lane.b32.xlu0 %v1020_v54, %s3318_s30  ;;  %1023 = vrot.lane.b32.xlu1 %v1019_v49, %s3318_s30 }
 0x7ce   :  { %1031 = vrot.lane.b32.xlu1 %v3751_v18, %s3317_s29 }
 0x7d2   :  { %1033 = vrot.lane.b32.xlu1 %v3753_v58, %s3317_s29 }
 0x83c   :  { %v1024_v55 = vpop.permute.xlu1 %1023  ;;  %v1026_v4 = vpop.permute.xlu0 %1025 }
 0x840   :  { %v1032_v61 = vpop.permute.xlu1 %1031 }
 0x841   :  { %v1037_v11 = vsel %vm383_vm11, %v1024_v55, %v1032_v61 }
 0x842   :  { %2768 = vmatprep.mubr.msk.f32.mxu1 %vm1039_vm8, %v1037_v11 }
 0x844   :  { %v1034_v8 = vpop.permute.xlu1 %1033 }
 0x845   :  { %v1038_v5 = vsel %vm383_vm11, %v1026_v4, %v1034_v8 }
 0x846   :  { %2769 = vmatmul.mubr.msk.f32.vlgmr.msra.gmra.mrb[16].mxu1 %vm1039_vm8, %v1038_v5 }
 0x847   :  { %2780 = vmatprep.mubr.msk.bf16.mxu1 %vm203_vm4, %v3453_v23 }
 0x919   :  { %v2770_v30 = vpop.f32.mrb[16].mxu1 }
 0x91a   :  { %v1118_v31 = vadd.f32 %v2770_v30, %v110_v59  ;;  %v1112_v32 = vpop.f32.mrb[17].mxu1  ;;  %v2535_v30 = vld [vmem:[%s4238_s5 + $0x20] sm:$0xff] }
 0x91b   :  { %v1113_v36 = vadd.f32 %v1112_v32, %v110_v59  ;;  %v2534_v59 = vld [vmem:[%s4238_s5 + $0x18] sm:$0xff]  ;;  %v2536_v32 = vld [vmem:[%s4238_s5 + $0x28] sm:$0x1f] }
 0x91c   :  { %v1122_v23 = vsub.f32 0.0, %v1118_v31 }
 0x91d   :  { %v1121_v37 = vsub.f32 0.0, %v1113_v36 }
 0x91e   :  { %v1125_v38 = vmul.f32 1.442695, %v1122_v23 }
 0x91f   :  { %v1123_v63 = vmul.f32 1.442695, %v1121_v37 }
 0x920   :  { %3149 = vpow2.f32 %v1125_v38 }
 0x921   :  { %3151 = vpow2.f32 %v1123_v63 }
 0x92a   :  { %v3150_v0 = vpop.eup %3149 }
 0x92b   :  { %v3152_v1 = vpop.eup %3151  ;;  %v1128_v2 = vadd.f32 1.0, %v3150_v0 }
 0x92c   :  { %v1127_v3 = vadd.f32 1.0, %v3152_v1 }
 0x92d   :  { %3153 = vrcp.f32 %v1128_v2 }
 0x92e   :  { %3155 = vrcp.f32 %v1127_v3 }
 0x937   :  { %v3154_v7 = vpop.eup %3153 }
 0x938   :  { %v3156_v9 = vpop.eup %3155  ;;  %v1132_v12 = vmul.f32 %v3154_v7, %v1118_v31  ;;  %v2958_v31 = vpack.c.bf16 %v2535_v30, %v2534_v59 }
 0x939   :  { %v1131_v10 = vmul.f32 %v3156_v9, %v1113_v36 }
 0x93b   :  { %2775 = vmatprep.mubr.msk.f32.mxu0 %vm203_vm4, %v1131_v10 }
 0x93c   :  { %2776 = vmatmul.mubr.msk.f32.vlgmr.msra.gmra.mrb[12].mxu0 %vm203_vm4, %v1132_v12 }
 0x93d   :  { %2786 = vmatprep.mubr.msk.bf16.mxu0 %vm203_vm4, %v3461_v28  ;;  %v948_v28 = vadd.f32 %v3236_v41, %v3751_v18 }
 0xa0f   :  { %v2777_v13 = vpop.f32.mrb[12].mxu0 }
 0xa10   :  { %1218 = vrot.lane.b32.xlu1 %v2777_v13, %s3320_s22  ;;  %v1205_v15 = vpop.f32.mrb[13].mxu0 }
 0xa11   :  { %1216 = vrot.lane.b32.xlu0 %v1205_v15, %s3320_s22 }
 0xa15   :  { %1225 = vrot.lane.b32.xlu0 %v111_v16, %s3320_s22 }
 0xa82   :  { %v1219_v19 = vpop.permute.xlu1 %1218 }
 0xa83   :  { %v1217_v21 = vpop.permute.xlu0 %1216  ;;  %v1223_v26 = vadd.f32 %v3235_v25, %v1219_v19 }
 0xa84   :  { %v1222_v27 = vadd.f32 %v3236_v41, %v1217_v21 }
 0xa87   :  { %v1226_v45 = vpop.permute.xlu0 %1225 }
 0xa88   :  { %v1228_v29 = vadd.f32 %v1226_v45, %v1222_v27  ;;  %v1229_v34 = vadd.f32 %v1226_v45, %v1223_v26  ;;  %v2538_v45 = vld [vmem:[%s4239_s6 + $0x38] sm:$0xff] }
 0xa8a   :  { %v3818_v39 = vsel %vm322_vm9, %v948_v28, %v1228_v29  ;;  %v3821_v35 = vsel %vm322_vm9, %v949_v51, %v1229_v34  ;;  %v2540_v51 = vld [vmem:[%s4239_s6 + $0x48] sm:$0xff]  ;;  %v2541_v34 = vld [vmem:[%s4239_s6 + $0x50] sm:$0xff] }
 0xa8b   :  { %v1284_v46 = vpack.c.bf16 %v3821_v35, %v3818_v39 }
 0xa8d   :  { %2778 = vmatprep.subr.bf16.mxu1 %v1284_v46  ;;  %2784 = vmatprep.subr.bf16.mxu0 %v1284_v46 }
 0xa8e   :  { %2779 = vmatpush3.bf16.msra.mxu1 %v1284_v46  ;;  %2785 = vmatpush3.bf16.msra.mxu0 %v1284_v46  ;;  %v2542_v46 = vld [vmem:[%s4239_s6 + $0x58] sm:$0x3] }
 0xa8f   :  { %2959 = vmatprep.subr.bf16.mxu1 %v2958_v31 }
 0xa91   :  { %2781 = vmatmul.mubr.msk.bf16.vlgmr.msra.gmra.mrb[20].mxu1 %vm203_vm4, %v3451_v22  ;;  %2787 = vmatmul.mubr.msk.bf16.vlgmr.msra.gmra.mrb[16].mxu0 %vm203_vm4, %v3467_v33 }
 0xa92   :  { %2961 = vmatpush3.bf16.msra.mxu1 %v2958_v31 }
 0xa93   :  { %2794 = vmatprep.subr.msk.mxu1 %vm410_vm10, %v2536_v32 }
 0xa96   :  { %2795 = vmatpush3.msk.msra.mxu1 %vm410_vm10, %v2536_v32 }
 0xb64   :  { %v2782_v18 = vpop.f32.mrb[20].mxu1  ;;  %v2788_v58 = vpop.f32.mrb[16].mxu0 }
 0xb65   :  { %v3829_v50 = vsub.f32 %v2782_v18, %v2788_v58  ;;  %1411 = vrot.lane.b32.xlu1 %v2788_v58, %s3318_s30  ;;  %v1368_v48 = vpop.f32.mrb[17].mxu0  ;;  %1427 = vrot.lane.b32.xlu0 %v2782_v18, %s3317_s29  ;;  %v1319_v43 = vpop.f32.mrb[21].mxu1  ;;  %v2970_v18 = vpack.c.bf16 %v2542_v46, %v2541_v34  ;;  %v1232_v58 = vld [vmem:[%s4245_s12 + $0x11] ss:$0 sm:$0xff]  ;;  %v2556_v46 = vld [vmem:[%s4240_s7 + $0xe8] sm:$0xff] }
 0xb66   :  { %v3833_v57 = vsub.f32 %v1319_v43, %v1368_v48  ;;  %v2783_v52 = vpop.f32.mrb[22].mxu1  ;;  %v2789_v49 = vpop.f32.mrb[18].mxu0 }
 0xb67   :  { %v3835_v54 = vsub.f32 %v2783_v52, %v2789_v49  ;;  %v1322_v22 = vpop.f32.mrb[23].mxu1  ;;  %v1371_v55 = vpop.f32.mrb[19].mxu0  ;;  %v1389_v33 = vmul.f32 %v3829_v50, %v3829_v50 }
 0xb68   :  { %v3837_v61 = vsub.f32 %v1322_v22, %v1371_v55  ;;  %v1387_v14 = vmul.f32 %v3833_v57, %v3833_v57 }
 0xb69   :  { %1407 = vrot.lane.b32.xlu1 %v1368_v48, %s3318_s30  ;;  %1423 = vrot.lane.b32.xlu0 %v1319_v43, %s3317_s29  ;;  %v1397_v11 = vsel %vm322_vm9, %v1389_v33, 0.0  ;;  %v1390_v4 = vmul.f32 %v3835_v54, %v3835_v54 }
 0xb6a   :  { %v1388_v5 = vmul.f32 %v3837_v61, %v3837_v61  ;;  %v1391_v56 = vsel %vm322_vm9, %v1387_v14, 0.0 }
 0xb6b   :  { %v1400_v8 = vsel %vm322_vm9, %v1390_v4, 0.0 }
 0xb6c   :  { %v1394_v6 = vsel %vm322_vm9, %v1388_v5, 0.0 }
 0xb6d   :  { %1409 = vrot.lane.b32.xlu1 %v1371_v55, %s3318_s30 }
 0xb71   :  { %1425 = vrot.lane.b32.xlu1 %v1322_v22, %s3317_s29 }
 0xb88   :  { %1398 = vadd.xlane.f32.xlu0 %v1397_v11 }
 0xb8c   :  { %1401 = vadd.xlane.f32.xlu0 %v1400_v8 }
 0xb90   :  { %1395 = vadd.xlane.f32.xlu0 %v1394_v6 }
 0xb95   :  { %1392 = vadd.xlane.f32.xlu1 %v1391_v56 }
 0xba6   :  { %1413 = vrot.lane.b32.xlu1 %v2789_v49, %s3318_s30  ;;  %1429 = vrot.lane.b32.xlu0 %v2783_v52, %s3317_s29 }
 0xbd7   :  { %v1412_v36 = vpop.permute.xlu1 %1411  ;;  %v1428_v23 = vpop.permute.xlu0 %1427 }
 0xbd8   :  { %v1437_v10 = vsel %vm383_vm11, %v1412_v36, %v1428_v23 }
 0xbd9   :  { %v1441_v19 = vsel %vm203_vm4, %v1437_v10, %v3535_v24  ;;  %v2537_v24 = vld [vmem:[%s4239_s6 + $0x30] sm:$0xff] }
 0xbda   :  { %v2962_v28 = vpack.c.bf16 %v2538_v45, %v2537_v24  ;;  %v2552_v45 = vld [vmem:[%s4240_s7 + $0xc8] sm:$0xff] }
 0xbdb   :  { %v1408_v37 = vpop.permute.xlu1 %1407  ;;  %v1424_v38 = vpop.permute.xlu0 %1423 }
 0xbdc   :  { %v1435_v3 = vsel %vm383_vm11, %v1408_v37, %v1424_v38  ;;  %2963 = vmatprep.subr.bf16.mxu0 %v2962_v28 }
 0xbdd   :  { %v1439_v12 = vsel %vm203_vm4, %v1435_v3, %v3520_v62  ;;  %2965 = vmatpush3.bf16.msra.mxu0 %v2962_v28  ;;  %v2554_v28 = vld [vmem:[%s4240_s7 + $0xd8] sm:$0xff] }
 0xbdf   :  { %v1410_v0 = vpop.permute.xlu1 %1409 }
 0xbe3   :  { %v1426_v2 = vpop.permute.xlu1 %1425 }
 0xbe4   :  { %v1436_v7 = vsel %vm383_vm11, %v1410_v0, %v1426_v2 }
 0xbe5   :  { %v1440_v15 = vsel %vm203_vm4, %v1436_v7, %v3518_v60 }
 0xc15   :  { %v1399_v63 = vpop.xlane.xlu0 %1398 }
 0xc16   :  { %v1445_v25 = vsel %vm392_vm12, %v1441_v19, %v1399_v63  ;;  %v2543_v19 = vld [vmem:[%s4240_s7 + $0x80] sm:$0xff] }
 0xc19   :  { %v1402_v1 = vpop.xlane.xlu0 %1401 }
 0xc1d   :  { %v1396_v9 = vpop.xlane.xlu0 %1395 }
 0xc1e   :  { %v1444_v21 = vsel %vm392_vm12, %v1440_v15, %v1396_v9  ;;  %v2546_v15 = vld [vmem:[%s4240_s7 + $0x98] sm:$0xff] }
 0xc21   :  { %v1430_v26 = vpop.permute.xlu0 %1429 }
 0xc22   :  { %v1393_v13 = vpop.xlane.xlu1 %1392 }
 0xc23   :  { %v1443_v16 = vsel %vm392_vm12, %v1439_v12, %v1393_v13  ;;  %v2544_v13 = vld [vmem:[%s4240_s7 + $0x88] sm:$0xff] }
 0xc24   :  { %2796 = vmatprep.mubr.msk.f32.mxu1 %vm397_vm13, %v1443_v16  ;;  %v2976_v16 = vpack.c.bf16 %v2546_v15, %v2544_v13 }
 0xc25   :  { %2797 = vmatmul.mubr.msk.f32.vlgmr.msra.gmra.mrb[18].mxu1 %vm397_vm13, %v1444_v21  ;;  %v2545_v21 = vld [vmem:[%s4240_s7 + $0x90] sm:$0xff] }
 0xc26   :  { %v1414_v41 = vpop.permute.xlu1 %1413  ;;  %2799 = vmatprep.mubr.msk.f32.mxu1 %vm397_vm13, %v1445_v25  ;;  %v2978_v25 = vpack.c.bf16 %v2545_v21, %v2543_v19  ;;  %2977 = vmatprep.subr.bf16.mxu1 %v2976_v16 }
 0xc27   :  { %v1438_v62 = vsel %vm383_vm11, %v1414_v41, %v1430_v26  ;;  %v2548_v26 = vld [vmem:[%s4240_s7 + $0xa8] sm:$0xff]  ;;  %v2550_v41 = vld [vmem:[%s4240_s7 + $0xb8] sm:$0xff] }
 0xc28   :  { %v1442_v60 = vsel %vm203_vm4, %v1438_v62, %v3532_v20  ;;  %v2539_v20 = vld [vmem:[%s4239_s6 + $0x40] sm:$0xff]  ;;  %2979 = vmatpush1.bf16.msra.mxu1 %v2978_v25  ;;  %v2980_v62 = vpack.c.bf16 %v2550_v41, %v2548_v26  ;;  %v2532_v26 = vld [vmem:[%s4245_s12 + $0x13] ss:$8 sm:$0x3] }
 0xc29   :  { %v1446_v27 = vsel %vm392_vm12, %v1442_v60, %v1402_v1  ;;  %v2966_v29 = vpack.c.bf16 %v2540_v51, %v2539_v20  ;;  %v2547_v60 = vld [vmem:[%s4240_s7 + $0xa0] sm:$0xff]  ;;  %v2984_v20 = vpack.c.bf16 %v2554_v28, %v2552_v45  ;;  %v1699_v41 = vrot.slane %v2532_v26, %v3660_v42 }
 0xc2a   :  { %2800 = vmatmul.mubr.msk.f32.gmra.mrb[24].mxu1 %vm397_vm13, %v1446_v27  ;;  %v2549_v27 = vld [vmem:[%s4240_s7 + $0xb0] sm:$0xff]  ;;  %2981 = vmatprep.subr.bf16.mxu1 %v2980_v62  ;;  %v2551_v51 = vld [vmem:[%s4240_s7 + $0xc0] sm:$0xff]  ;;  %v1703_v62 = vrot.slane %v2532_v26, %v3666_v47 }
 0xc2b   :  { %1782 = vmatprep.mubr.f32.mxu1 %v3316_v17  ;;  %2967 = vmatprep.subr.bf16.mxu0 %v2966_v29  ;;  %v2982_v24 = vpack.c.bf16 %v2549_v27, %v2547_v60 }
 0xc2c   :  { %2969 = vmatpush3.bf16.msra.mxu0 %v2966_v29  ;;  %v2553_v29 = vld [vmem:[%s4240_s7 + $0xd0] sm:$0xff] }
 0xc2d   :  { %2972 = vmatprep.subr.msk.bf16.mxu0 %vm3566_vm0, %v2970_v18  ;;  %2983 = vmatpush1.bf16.msra.mxu1 %v2982_v24  ;;  %v2986_v34 = vpack.c.bf16 %v2553_v29, %v2551_v51 }
 0xc2e   :  { %2985 = vmatprep.subr.bf16.mxu1 %v2984_v20 }
 0xc30   :  { %2975 = vmatpush3.bf16.msk.msra.mxu0 %vm3566_vm0, %v2970_v18  ;;  %v2558_v18 = vld [vmem:[%s4240_s7 + $0xf8] sm:$0xff]  ;;  %vm2319_vm0 = vcmask 1040384  }
 0xc31   :  { %2820 = vmatprep.subr.bf16.mxu0 %v3316_v17  ;;  %2987 = vmatpush1.bf16.msra.mxu1 %v2986_v34 }
 0xcf8   :  { %v2798_v48 = vpop.f32.mrb[18].mxu1 }
 0xcf9   :  { %v1534_v43 = vadd.f32 %v2798_v48, %v1232_v58  ;;  %v1528_v52 = vpop.f32.mrb[19].mxu1  ;;  %v2555_v48 = vld [vmem:[%s4240_s7 + $0xe0] sm:$0xff] }
 0xcfa   :  { %v1529_v49 = vadd.f32 %v1528_v52, %v1232_v58 }
 0xcfb   :  { %v1548_v22 = vsub.f32 0.0, %v1534_v43 }
 0xcfc   :  { %v1547_v55 = vsub.f32 0.0, %v1529_v49 }
 0xcfd   :  { %v1553_v33 = vmul.f32 1.442695, %v1548_v22  ;;  %v2801_v11 = vpop.f32.mrb[24].mxu1 }
 0xcfe   :  { %v1551_v4 = vmul.f32 1.442695, %v1547_v55  ;;  %v1544_v8 = vadd.f32 %v2801_v11, %v1232_v58  ;;  %v1538_v5 = vpop.f32.mrb[25].mxu1 }
 0xcff   :  { %3157 = vpow2.f32 %v1553_v33  ;;  %v1539_v44 = vadd.f32 %v1538_v5, %v1232_v58  ;;  %v2988_v58 = vpack.c.bf16 %v2558_v18, %v2556_v46 }
 0xd00   :  { %3159 = vpow2.f32 %v1551_v4  ;;  %v1550_v6 = vsub.f32 0.0, %v1544_v8 }
 0xd01   :  { %v1549_v14 = vsub.f32 0.0, %v1539_v44  ;;  %2989 = vmatprep.subr.bf16.mxu1 %v2988_v58 }
 0xd02   :  { %v1557_v56 = vmul.f32 1.442695, %v1550_v6 }
 0xd03   :  { %v1555_v59 = vmul.f32 1.442695, %v1549_v14 }
 0xd04   :  { %3161 = vpow2.f32 %v1557_v56 }
 0xd05   :  { %3163 = vpow2.f32 %v1555_v59 }
 0xd09   :  { %v3158_v30 = vpop.eup %3157 }
 0xd0a   :  { %v3160_v31 = vpop.eup %3159  ;;  %v1560_v32 = vadd.f32 1.0, %v3158_v30 }
 0xd0b   :  { %v1559_v36 = vadd.f32 1.0, %v3160_v31 }
 0xd0c   :  { %3165 = vrcp.f32 %v1560_v32 }
 0xd0d   :  { %3167 = vrcp.f32 %v1559_v36 }
 0xd0e   :  { %v3162_v23 = vpop.eup %3161 }
 0xd0f   :  { %v3164_v37 = vpop.eup %3163  ;;  %v1562_v38 = vadd.f32 1.0, %v3162_v23 }
 0xd10   :  { %v1561_v63 = vadd.f32 1.0, %v3164_v37 }
 0xd11   :  { %3169 = vrcp.f32 %v1562_v38 }
 0xd12   :  { %3171 = vrcp.f32 %v1561_v63 }
 0xd16   :  { %v3166_v0 = vpop.eup %3165 }
 0xd17   :  { %v3168_v1 = vpop.eup %3167  ;;  %v1568_v3 = vmul.f32 %v3166_v0, %v1534_v43  ;;  %v2557_v43 = vld [vmem:[%s4240_s7 + $0xf0] sm:$0xff]  ;;  %s2487_s7 = sshll.u32 %s3323_s26, 4  ;;  %s2488_s7 = int_to_ptr.vmem [resolvable:$true] %s2487_s7 }
 0xd18   :  { %v1567_v2 = vmul.f32 %v3168_v1, %v1529_v49  ;;  %v2990_v52 = vpack.c.bf16 %v2557_v43, %v2555_v48  ;;  %v1233_v49 = vld [vmem:[%s4245_s12 + $0x12] ss:$0 sm:$0xff]  ;;  %p3286_p3 = scmp.lt.s32.totalorder %s2488_s7, %s2488_s7 }
 0xd1a   :  { %2814 = vmatprep.mubr.msk.f32.mxu0 %vm523_vm1, %v1567_v2  ;;  %2991 = vmatpush1.bf16.msra.mxu1 %v2990_v52 }
 0xd1b   :  { %v3170_v7 = vpop.eup %3169  ;;  %2815 = vmatmul.mubr.msk.f32.vlgmr.msra.gmra.mrb[14].mxu0 %vm523_vm1, %v1568_v3 }
 0xd1c   :  { %v3172_v9 = vpop.eup %3171  ;;  %v1570_v12 = vmul.f32 %v3170_v7, %v1544_v8 }
 0xd1d   :  { %v1569_v10 = vmul.f32 %v3172_v9, %v1539_v44 }
 0xd1f   :  { %2817 = vmatprep.mubr.msk.f32.mxu0 %vm523_vm1, %v1569_v10 }
 0xd20   :  { %2818 = vmatmul.mubr.msk.f32.gmra.mrb[20].mxu0 %vm523_vm1, %v1570_v12 }
 0xd21   :  { %2824 = vmatprep.mubr.msk.bf16.mxu0 %vm3321_vm3, %v3316_v17 }
 0xdee   :  { %v2816_v22 = vpop.f32.mrb[14].mxu0 }
 0xdef   :  { %v1658_v55 = vadd.f32 %v2816_v22, %v1233_v49  ;;  %v1652_v33 = vpop.f32.mrb[15].mxu0 }
 0xdf0   :  { %v1653_v11 = vadd.f32 %v1652_v33, %v1233_v49 }
 0xdf1   :  { %v1672_v4 = vsub.f32 0.0, %v1658_v55 }
 0xdf2   :  { %v1671_v8 = vsub.f32 0.0, %v1653_v11 }
 0xdf3   :  { %v1677_v5 = vmul.f32 1.442695, %v1672_v4  ;;  %v2819_v44 = vpop.f32.mrb[20].mxu0 }
 0xdf4   :  { %v1675_v6 = vmul.f32 1.442695, %v1671_v8  ;;  %v1668_v14 = vadd.f32 %v2819_v44, %v1233_v49  ;;  %v1662_v56 = vpop.f32.mrb[21].mxu0 }
 0xdf5   :  { %3173 = vpow2.f32 %v1677_v5  ;;  %v1663_v59 = vadd.f32 %v1662_v56, %v1233_v49 }
 0xdf6   :  { %3175 = vpow2.f32 %v1675_v6  ;;  %v1674_v30 = vsub.f32 0.0, %v1668_v14 }
 0xdf7   :  { %v1673_v31 = vsub.f32 0.0, %v1663_v59 }
 0xdf8   :  { %v1681_v32 = vmul.f32 1.442695, %v1674_v30 }
 0xdf9   :  { %v1679_v36 = vmul.f32 1.442695, %v1673_v31 }
 0xdfa   :  { %3177 = vpow2.f32 %v1681_v32 }
 0xdfb   :  { %3179 = vpow2.f32 %v1679_v36 }
 0xdff   :  { %v3174_v23 = vpop.eup %3173 }
 0xe00   :  { %v3176_v37 = vpop.eup %3175  ;;  %v1684_v38 = vadd.f32 1.0, %v3174_v23 }
 0xe01   :  { %v1683_v63 = vadd.f32 1.0, %v3176_v37 }
 0xe02   :  { %3181 = vrcp.f32 %v1684_v38 }
 0xe03   :  { %3183 = vrcp.f32 %v1683_v63 }
 0xe04   :  { %v3178_v0 = vpop.eup %3177 }
 0xe05   :  { %v3180_v1 = vpop.eup %3179  ;;  %v1686_v2 = vadd.f32 1.0, %v3178_v0 }
 0xe06   :  { %v1685_v3 = vadd.f32 1.0, %v3180_v1 }
 0xe07   :  { %3185 = vrcp.f32 %v1686_v2 }
 0xe08   :  { %3187 = vrcp.f32 %v1685_v3 }
 0xe0c   :  { %v3182_v7 = vpop.eup %3181 }
 0xe0d   :  { %v3184_v9 = vpop.eup %3183  ;;  %v3972_v10 = vmul.f32 %v3182_v7, %v1658_v55 }
 0xe0e   :  { %v3974_v12 = vmul.f32 %v3184_v9, %v1653_v11 }
 0xe10   :  { %2584 = vmatmul.mubr.msk.f32.vlgmr.msra.gmra.mrb[26].mxu1 %vm660_vm2, %v3974_v12  ;;  %v3071_v13 = vpack.i.bf16 %v3972_v10, %v3974_v12 }
 0xe11   :  { %v3186_v15 = vpop.eup %3185  ;;  %1788 = vmatprep.mubr.f32.mxu1 %v3316_v17 }
 0xe12   :  { %v3188_v16 = vpop.eup %3187  ;;  %v3981_v19 = vmul.f32 %v3186_v15, %v1668_v14 }
 0xe13   :  { %v3983_v21 = vmul.f32 %v3188_v16, %v1663_v59  ;;  %v2533_v16 = vld [vmem:[%s4245_s12 + $0x14] ss:$8 sm:$0x3] }
 0xe14   :  { %2585 = vmatmul.mubr.msk.f32.gmra.mrb[28].mxu1 %vm660_vm2, %v3972_v10 }
 0xe15   :  { %1794 = vmatprep.mubr.f32.mxu1 %v3316_v17  ;;  %v3076_v25 = vpack.i.bf16 %v3981_v19, %v3983_v21 }
 0xe18   :  { %2586 = vmatmul.mubr.msk.f32.gmra.mrb[30].mxu1 %vm660_vm2, %v3983_v21 }
 0xe19   :  { %1800 = vmatprep.mubr.f32.mxu1 %v3316_v17 }
 0xe1c   :  { %2587 = vmatmul.mubr.msk.f32.gmra.mrb[32].mxu1 %vm660_vm2, %v3981_v19 }
 0xee3   :  { %v1784_v60 = vpop.f32.mrb[26].mxu1 }
 0xee4   :  { %v4000_v27 = vadd.f32 %v1784_v60, %v1699_v41  ;;  %v1786_v24 = vpop.f32.mrb[27].mxu1 }
 0xee5   :  { %v4002_v45 = vadd.f32 %v1786_v24, %v1703_v62 }
 0xee6   :  { %v1807_v28 = vsub.f32 0.0, %v4000_v27 }
 0xee7   :  { %v1808_v20 = vsub.f32 0.0, %v4002_v45  ;;  %v1790_v51 = vpop.f32.mrb[28].mxu1 }
 0xee8   :  { %v1815_v29 = vmul.f32 1.442695, %v1807_v28  ;;  %v4006_v34 = vadd.f32 %v1790_v51, %v1699_v41  ;;  %v1792_v46 = vpop.f32.mrb[29].mxu1  ;;  %v1863_v28 = vrot.slane %v2533_v16, %v3666_v47 }
 0xee9   :  { %v1817_v18 = vmul.f32 1.442695, %v1808_v20  ;;  %v4008_v58 = vadd.f32 %v1792_v46, %v1703_v62 }
 0xeea   :  { %3189 = vpow2.f32 %v1815_v29  ;;  %v1809_v48 = vsub.f32 0.0, %v4006_v34 }
 0xeeb   :  { %3191 = vpow2.f32 %v1817_v18  ;;  %v1810_v43 = vsub.f32 0.0, %v4008_v58  ;;  %v1796_v52 = vpop.f32.mrb[30].mxu1 }
 0xeec   :  { %v1819_v49 = vmul.f32 1.442695, %v1809_v48  ;;  %v4012_v22 = vadd.f32 %v1796_v52, %v1699_v41  ;;  %v1798_v55 = vpop.f32.mrb[31].mxu1 }
 0xeed   :  { %v1821_v33 = vmul.f32 1.442695, %v1810_v43  ;;  %v4014_v11 = vadd.f32 %v1798_v55, %v1703_v62 }
 0xeee   :  { %3193 = vpow2.f32 %v1819_v49  ;;  %v1811_v4 = vsub.f32 0.0, %v4012_v22 }
 0xeef   :  { %3195 = vpow2.f32 %v1821_v33  ;;  %v1812_v8 = vsub.f32 0.0, %v4014_v11  ;;  %v1802_v5 = vpop.f32.mrb[32].mxu1 }
 0xef0   :  { %v1823_v44 = vmul.f32 1.442695, %v1811_v4  ;;  %v1803_v6 = vadd.f32 %v1802_v5, %v1699_v41  ;;  %v1804_v14 = vpop.f32.mrb[33].mxu1 }
 0xef1   :  { %v1825_v56 = vmul.f32 1.442695, %v1812_v8  ;;  %v1805_v59 = vadd.f32 %v1804_v14, %v1703_v62  ;;  %v1859_v62 = vrot.slane %v2533_v16, %v3660_v42 }
 0xef2   :  { %3197 = vpow2.f32 %v1823_v44  ;;  %v1813_v30 = vsub.f32 0.0, %v1803_v6 }
 0xef3   :  { %3199 = vpow2.f32 %v1825_v56  ;;  %v1814_v31 = vsub.f32 0.0, %v1805_v59 }
 0xef4   :  { %v3190_v32 = vpop.eup %3189  ;;  %v1827_v36 = vmul.f32 1.442695, %v1813_v30 }
 0xef5   :  { %v3192_v23 = vpop.eup %3191  ;;  %v1831_v37 = vadd.f32 1.0, %v3190_v32  ;;  %v1829_v38 = vmul.f32 1.442695, %v1814_v31 }
 0xef6   :  { %v1832_v63 = vadd.f32 1.0, %v3192_v23  ;;  %3201 = vpow2.f32 %v1827_v36 }
 0xef7   :  { %3203 = vrcp.f32 %v1831_v37 }
 0xef8   :  { %v3194_v0 = vpop.eup %3193  ;;  %3205 = vrcp.f32 %v1832_v63 }
 0xef9   :  { %v3196_v1 = vpop.eup %3195  ;;  %v1833_v2 = vadd.f32 1.0, %v3194_v0  ;;  %3207 = vpow2.f32 %v1829_v38 }
 0xefa   :  { %v1834_v3 = vadd.f32 1.0, %v3196_v1 }
 0xefb   :  { %3209 = vrcp.f32 %v1833_v2 }
 0xefc   :  { %v3198_v7 = vpop.eup %3197  ;;  %3211 = vrcp.f32 %v1834_v3 }
 0xefd   :  { %v3200_v9 = vpop.eup %3199  ;;  %v1835_v15 = vadd.f32 1.0, %v3198_v7 }
 0xefe   :  { %v1836_v26 = vadd.f32 1.0, %v3200_v9 }
 0xeff   :  { %3213 = vrcp.f32 %v1835_v15 }
 0xf00   :  { %v3202_v41 = vpop.eup %3201  ;;  %3215 = vrcp.f32 %v1836_v26 }
 0xf01   :  { %v3204_v60 = vpop.eup %3203  ;;  %v1837_v24 = vadd.f32 1.0, %v3202_v41 }
 0xf02   :  { %v3206_v20 = vpop.eup %3205  ;;  %v1847_v51 = vmul.f32 %v3204_v60, %v4000_v27 }
 0xf03   :  { %v3208_v29 = vpop.eup %3207  ;;  %v1848_v46 = vmul.f32 %v3206_v20, %v4002_v45  ;;  %3217 = vrcp.f32 %v1837_v24 }
 0xf04   :  { %v1838_v18 = vadd.f32 1.0, %v3208_v29  ;;  %v1866_v48 = vmul.f32 %v1859_v62, %v1847_v51 }
 0xf05   :  { %v3210_v43 = vpop.eup %3209  ;;  %v1867_v52 = vmul.f32 %v1863_v28, %v1848_v46 }
 0xf06   :  { %v3212_v49 = vpop.eup %3211  ;;  %v1849_v55 = vmul.f32 %v3210_v43, %v4006_v34  ;;  %3219 = vrcp.f32 %v1838_v18 }
 0xf07   :  { %v1850_v42 = vmul.f32 %v3212_v49, %v4008_v58  ;;  %v1874_v33 = vadd.f32 %v1867_v52, %v1866_v48 }
 0xf08   :  { %v1868_v4 = vmul.f32 %v1859_v62, %v1849_v55 }
 0xf09   :  { %v3214_v47 = vpop.eup %3213  ;;  %1875 = vadd.xlane.f32.xlu1 %v1874_v33  ;;  %v1869_v8 = vmul.f32 %v1863_v28, %v1850_v42 }
 0xf0a   :  { %v3216_v27 = vpop.eup %3215  ;;  %v1851_v5 = vmul.f32 %v3214_v47, %v4012_v22  ;;  %v1238_v22 = vld [vmem:[%s4245_s12 + $0x15] ss:$0 sm:$0xff] }
 0xf0b   :  { %v1852_v45 = vmul.f32 %v3216_v27, %v4014_v11  ;;  %v1877_v44 = vadd.f32 %v1869_v8, %v1868_v4 }
 0xf0c   :  { %v1870_v14 = vmul.f32 %v1859_v62, %v1851_v5 }
 0xf0d   :  { %v3218_v56 = vpop.eup %3217  ;;  %1878 = vadd.xlane.f32.xlu0 %v1877_v44  ;;  %v1871_v30 = vmul.f32 %v1863_v28, %v1852_v45 }
 0xf0e   :  { %v1853_v31 = vmul.f32 %v3218_v56, %v1803_v6  ;;  %v1240_v56 = vld [vmem:[%s4245_s12 + $0x17] ss:$0 sm:$0xff] }
 0xf0f   :  { %v1880_v34 = vadd.f32 %v1871_v30, %v1870_v14  ;;  %v1239_v30 = vld [vmem:[%s4245_s12 + $0x16] ss:$0 sm:$0xff] }
 0xf10   :  { %v3220_v32 = vpop.eup %3219  ;;  %v1872_v58 = vmul.f32 %v1859_v62, %v1853_v31 }
 0xf11   :  { %v1854_v36 = vmul.f32 %v3220_v32, %v1805_v59  ;;  %1881 = vadd.xlane.f32.xlu0 %v1880_v34 }
 0xf13   :  { %v1873_v23 = vmul.f32 %v1863_v28, %v1854_v36 }
 0xf15   :  { %v1883_v37 = vadd.f32 %v1873_v23, %v1872_v58  ;;  %v2559_v58 = vld [vmem:[%s4241_s8 + $0x48] sm:$0xff]  ;;  %v2560_v23 = vld [vmem:[%s4241_s8 + $0x50] sm:$0xff] }
 0xf17   :  { %1884 = vadd.xlane.f32.xlu0 %v1883_v37  ;;  %v2561_v37 = vld [vmem:[%s4241_s8 + $0x58] sm:$0xff] }
 0xf1a   :  { %1977 = vrot.lane.b32.xlu1 %v3818_v39, %s3318_s30 }
 0xf1e   :  { %3072 = vrot.lane.b32.xlu1 %v3071_v13, %s3320_s22 }
 0xf2d   :  { %1979 = vrot.lane.b32.xlu0 %v3821_v35, %s3318_s30 }
 0xf31   :  { %3077 = vrot.lane.b32.xlu0 %v3076_v25, %s3320_s22 }
 0xf96   :  { %v1876_v11 = vpop.xlane.xlu1 %1875 }
 0xf97   :  { %v1886_v6 = vadd.f32 %v1876_v11, %v1238_v22  ;;  %v2562_v11 = vld [vmem:[%s4241_s8 + $0x60] sm:$0xff] }
 0xf99   :  { %1892 = vperm.xlu1 %3069, %v1886_v6   ;;  %v2996_v6 = vpack.c.bf16 %v2562_v11, %v2561_v37 }
 0xf9a   :  { %v1879_v59 = vpop.xlane.xlu0 %1878  ;;  %v1978_v0 = vpop.permute.xlu1 %1977 }
 0xf9b   :  { %v1887_v38 = vadd.f32 %v1879_v59, %v1238_v22  ;;  %v1983_v19 = vsel %vm383_vm11, %v1978_v0, 0.0  ;;  %v2563_v59 = vld [vmem:[%s4241_s8 + $0x68] sm:$0xff] }
 0xf9d   :  { %1897 = vperm.xlu1 %3069, %v1887_v38   ;;  %v2564_v38 = vld [vmem:[%s4241_s8 + $0x70] sm:$0xff] }
 0xf9e   :  { %v1882_v10 = vpop.xlane.xlu0 %1881  ;;  %v3073_v25 = vpop.permute.xlu1 %3072 }
 0xf9f   :  { %v1888_v12 = vadd.f32 %v1882_v10, %v1238_v22  ;;  %v3075_v9 = vunpack.i.h.bf16 %v3073_v25  ;;  %v3074_v15 = vunpack.i.l.bf16 %v3073_v25  ;;  %v3000_v10 = vpack.c.bf16 %v2564_v38, %v2563_v59 }
 0xfa1   :  { %1902 = vperm.xlu1 %3069, %v1888_v12   ;;  %v2565_v12 = vld [vmem:[%s4241_s8 + $0x78] sm:$0xff] }
 0xfa4   :  { %v1885_v13 = vpop.xlane.xlu0 %1884 }
 0xfa5   :  { %v1889_v63 = vadd.f32 %v1885_v13, %v1238_v22  ;;  %v2992_v22 = vpack.c.bf16 %v2560_v23, %v2559_v58  ;;  %v2566_v13 = vld [vmem:[%s4241_s8 + $0x80] sm:$0xff] }
 0xfa7   :  { %1907 = vperm.xlu0 %3070, %v1889_v63   ;;  %2993 = vmatprep.subr.bf16.mxu1 %v2992_v22  ;;  %v3004_v63 = vpack.c.bf16 %v2566_v13, %v2565_v12  ;;  %v2497_v12 = vld [vmem:[%s4236_s3] ss:$0 sm:$0xff] }
 0xfa8   :  { %v1980_v1 = vpop.permute.xlu0 %1979  ;;  %2995 = vmatpush3.bf16.msra.mxu1 %v2992_v22  ;;  %vm91_vm13 = vcmp.eq.s32.totalorder %v3657_v40, %v2497_v12 }
 0xfa9   :  { %v1986_v21 = vsel %vm383_vm11, %v1980_v1, 0.0  ;;  %2997 = vmatprep.subr.bf16.mxu1 %v2996_v6 }
 0xfac   :  { %v3078_v60 = vpop.permute.xlu0 %3077  ;;  %2999 = vmatpush3.bf16.msra.mxu1 %v2996_v6 }
 0xfad   :  { %v3080_v51 = vunpack.i.h.bf16 %v3078_v60  ;;  %3001 = vmatprep.subr.bf16.mxu1 %v3000_v10 }
 0xfb0   :  { %3003 = vmatpush3.bf16.msra.mxu1 %v3000_v10  ;;  %v1242_v10 = vld [vmem:[%s4245_s12 + $0x21] ss:$0 sm:$0xff] }
 0xfb1   :  { %3005 = vmatprep.subr.bf16.mxu1 %v3004_v63 }
 0xfb4   :  { %3007 = vmatpush3.bf16.msra.mxu1 %v3004_v63 }
 0xfc5   :  { %1984 = vadd.xlane.f32.xlu1 %v1983_v19 }
 0xfc6   :  { %1987 = vadd.xlane.f32.xlu0 %v1986_v21 }
0x1018   :  { %v1893_v2 = vpop.permute.xlu1 %1892 }
0x1019   :  { %v1910_v3 = vmul.f32 %v1893_v2, %v3833_v57  ;;  %v3079_v57 = vunpack.i.l.bf16 %v3078_v60 }
0x101b   :  { %v1926_v26 = vsel %vm322_vm9, %v1910_v3, %v3074_v15 }
0x101c   :  { %v1898_v7 = vpop.permute.xlu1 %1897 }
0x101d   :  { %v1911_v16 = vmul.f32 %v1898_v7, %v3837_v61 }
0x101f   :  { %v1927_v41 = vsel %vm322_vm9, %v1911_v16, %v3075_v9 }
0x1020   :  { %v1930_v62 = vpack.c.bf16 %v1927_v41, %v1926_v26  ;;  %v1903_v24 = vpop.permute.xlu1 %1902 }
0x1021   :  { %v1912_v28 = vmul.f32 %v1903_v24, %v3829_v50 }
0x1022   :  { %2821 = vmatpush3.bf16.msra.mxu0 %v1930_v62 }
0x1023   :  { %2822 = vmatprep.subr.bf16.mxu0 %v3316_v17  ;;  %v1928_v46 = vsel %vm322_vm9, %v1912_v28, %v3079_v57  ;;  %v2567_v28 = vld [vmem:[%s4241_s8 + $0x88] sm:$0xff] }
0x1024   :  { %2844 = vmatprep.subr.mxu1 %v2567_v28 }
0x1025   :  { %2845 = vmatpush3.msra.mxu1 %v2567_v28 }
0x1026   :  { %v1908_v20 = vpop.permute.xlu0 %1907 }
0x1027   :  { %v1913_v29 = vmul.f32 %v1908_v20, %v3835_v54 }
0x1029   :  { %v1929_v61 = vsel %vm322_vm9, %v1913_v29, %v3080_v51 }
0x102a   :  { %v1931_v18 = vpack.c.bf16 %v1929_v61, %v1928_v46 }
0x102c   :  { %2823 = vmatpush3.bf16.msra.mxu0 %v1931_v18 }
0x102d   :  { %2856 = vmatprep.subr.bf16.mxu0 %v3316_v17 }
0x102f   :  { %2825 = vmatmul.mubr.msk.bf16.vlgmr.msra.gmra.mrb[24].mxu0 %vm903_vm5, %v3725_v53 }
0x1030   :  { %2858 = vmatprep.mubr.msk.bf16.mxu0 %vm3321_vm3, %v3316_v17 }
0x1052   :  { %v1985_v50 = vpop.xlane.xlu1 %1984 }
0x1053   :  { %v1988_v48 = vpop.xlane.xlu0 %1987 }
0x1054   :  { %v1989_v43 = vadd.f32 %v1988_v48, %v1985_v50 }
0x1056   :  { %v1990_v52 = vrot.slane %v1989_v43, 4 }
0x1058   :  { %v1991_v49 = vadd.f32 %v1990_v52, %v1989_v43 }
0x105a   :  { %v1992_v54 = vrot.slane %v1991_v49, 2 }
0x105c   :  { %v1993_v55 = vadd.f32 %v1992_v54, %v1991_v49 }
0x105e   :  { %v1994_v42 = vrot.slane %v1993_v55, 1 }
0x1060   :  { %v1995_v33 = vadd.f32 %v1994_v42, %v1993_v55 }
0x1062   :  { %v1996_v4 = vmul.f32 0.0078125, %v1995_v33  ;;  %v2568_v33 = vld [vmem:[%s4242_s9 + $0x10] sm:$0xff] }
0x1064   :  { %v4061_v47 = vsub.f32 %v3821_v35, %v1996_v4  ;;  %v4064_v8 = vsub.f32 %v3818_v39, %v1996_v4  ;;  %v2569_v4 = vld [vmem:[%s4242_s9 + $0x18] sm:$0xff] }
0x1066   :  { %v2000_v53 = vmul.f32 %v4061_v47, %v4061_v47  ;;  %v1999_v27 = vmul.f32 %v4064_v8, %v4064_v8 }
0x1068   :  { %2005 = vrot.lane.b32.xlu1 %v2000_v53, %s3318_s30  ;;  %2003 = vrot.lane.b32.xlu0 %v1999_v27, %s3318_s30 }
0x10da   :  { %v2006_v5 = vpop.permute.xlu1 %2005  ;;  %v2004_v45 = vpop.permute.xlu0 %2003 }
0x10db   :  { %v2012_v44 = vsel %vm383_vm11, %v2006_v5, 0.0  ;;  %v2009_v14 = vsel %vm383_vm11, %v2004_v45, 0.0 }
0x10dc   :  { %2013 = vadd.xlane.f32.xlu0 %v2012_v44  ;;  %2010 = vadd.xlane.f32.xlu1 %v2009_v14 }
0x10ed   :  { %2041 = vrot.lane.b32.xlu1 %v1240_v56, %s3320_s22 }
0x10f2   :  { %2035 = vrot.lane.b32.xlu0 %v1239_v30, %s3320_s22 }
0x1102   :  { %v4082_v31 = vpop.f32.mrb[24].mxu0 }
0x1103   :  { %2056 = vrot.lane.b32.xlu0 %v4082_v31, %s3317_s29  ;;  %v2826_v34 = vpop.f32.mrb[25].mxu0 }
0x1104   :  { %v4086_v32 = vpop.f32.mrb[26].mxu0 }
0x1105   :  { %v2827_v36 = vpop.f32.mrb[27].mxu0 }
0x1107   :  { %2058 = vrot.lane.b32.xlu0 %v4086_v32, %s3317_s29 }
0x1169   :  { %v2011_v0 = vpop.xlane.xlu1 %2010  ;;  %v2014_v1 = vpop.xlane.xlu0 %2013 }
0x116a   :  { %v2015_v19 = vadd.f32 %v2014_v1, %v2011_v0  ;;  %v2498_v0 = vsel %vm91_vm13, 1.0, %v3316_v17 }
0x116b   :  { %v96_v1 = vsel %vm95_vm14, %v2498_v0, 0.0 }
0x116c   :  { %v2016_v21 = vrot.slane %v2015_v19, 4 }
0x116d   :  { %v2036_v29 = vpop.permute.xlu0 %2035  ;;  %v2042_v46 = vpop.permute.xlu1 %2041 }
0x116e   :  { %v2017_v25 = vadd.f32 %v2016_v21, %v2015_v19 }
0x1170   :  { %v2018_v2 = vrot.slane %v2017_v25, 2 }
0x1172   :  { %v2019_v3 = vadd.f32 %v2018_v2, %v2017_v25  ;;  %v1973_v2 = vadd.f32 %v4082_v31, %v3818_v39  ;;  %v2314_v31 = vld [vmem:[#allocation5 + $0x8] sm:$0x1] }
0x1174   :  { %v2020_v7 = vrot.slane %v2019_v3, 1 }
0x1175   :  { %v2057_v43 = vpop.permute.xlu0 %2056 }
0x1176   :  { %v2021_v9 = vadd.f32 %v2020_v7, %v2019_v3  ;;  %v1974_v3 = vadd.f32 %v4086_v32, %v3821_v35 }
0x1178   :  { %v2022_v15 = vmul.f32 0.0078125, %v2021_v9 }
0x1179   :  { %v2059_v54 = vpop.permute.xlu0 %2058 }
0x117a   :  { %3221 = vrsqrt.f32 %v2022_v15  ;;  %vm2025_vm10 = vcmp.eq.f32.partialorder %v2022_v15, inf  ;;  %v2028_v41 = vand.u32 2147483648, %v2022_v15  ;;  %vm2027_vm12 = vcmp.eq.f32.partialorder %v2022_v15, 0.0 }
0x1184   :  { %v3222_v16 = vpop.eup %3221 }
0x1185   :  { %v2024_v26 = vmul.f32 %v3222_v16, %v2022_v15 }
0x1187   :  { %v2026_v62 = vsel %vm2025_vm10, %v2022_v15, %v2024_v26  ;;  %v2305_v26 = vld [vmem:[%s4237_s4] sm:$0x3] }
0x1188   :  { %v2029_v60 = vsel %vm2027_vm12, %v2028_v41, %v2026_v62  ;;  %v3322_v62 = vmov 0.0|0.0  }
0x1189   :  { %v2030_v24 = vadd.f32 1e-05, %v2029_v60  ;;  %v2394_v60 = vld [vmem:[%s4244_s11] sm:$0xff] }
0x118b   :  { %3223 = vrcp.f32 %v2030_v24  ;;  %v2395_v24 = vld [vmem:[%s4244_s11 + $0x8] sm:$0xff] }
0x118c   :  { %v3017_v28 = vpack.c.bf16 %v2395_v24, %v2394_v60 }
0x1195   :  { %v3224_v20 = vpop.eup %3223 }
0x1196   :  { %v2032_v51 = vmul.f32 %v3224_v20, %v4064_v8  ;;  %v2033_v57 = vmul.f32 %v3224_v20, %v4061_v47  ;;  %v3008_v47 = vpack.c.bf16 %v2569_v4, %v2568_v33  ;;  %v1241_v8 = vld [vmem:[%s4245_s12 + $0x20] ss:$0 sm:$0xff]  ;;  %v2397_v20 = vld [vmem:[%s4244_s11 + $0x18] sm:$0xff]  ;;  %v2407_v33 = vld [vmem:[%s4244_s11 + $0x68] sm:$0xff] }
0x1198   :  { %v2038_v61 = vmul.f32 %v2036_v29, %v2032_v51  ;;  %v2039_v18 = vmul.f32 %v2036_v29, %v2033_v57  ;;  %3009 = vmatprep.subr.bf16.mxu1 %v3008_v47  ;;  %v2398_v57 = vld [vmem:[%s4244_s11 + $0x20] sm:$0xff]  ;;  %v2399_v29 = vld [vmem:[%s4244_s11 + $0x28] sm:$0xff] }
0x119a   :  { %v2044_v50 = vadd.f32 %v2042_v46, %v2038_v61  ;;  %v2045_v48 = vadd.f32 %v2042_v46, %v2039_v18  ;;  %v3023_v46 = vpack.c.bf16 %v2399_v29, %v2398_v57  ;;  %v2400_v61 = vld [vmem:[%s4244_s11 + $0x30] sm:$0xff]  ;;  %v2401_v18 = vld [vmem:[%s4244_s11 + $0x38] sm:$0xff] }
0x119c   :  { %2048 = vrot.lane.b32.xlu1 %v2044_v50, %s3318_s30  ;;  %v3026_v50 = vpack.c.bf16 %v2401_v18, %v2400_v61 }
0x11a0   :  { %2050 = vrot.lane.b32.xlu1 %v2045_v48, %s3318_s30  ;;  %v2402_v48 = vld [vmem:[%s4244_s11 + $0x40] sm:$0xff] }
0x120e   :  { %v2049_v52 = vpop.permute.xlu1 %2048 }
0x120f   :  { %v2062_v49 = vsel %vm383_vm11, %v2049_v52, %v2057_v43  ;;  %v2403_v43 = vld [vmem:[%s4244_s11 + $0x48] sm:$0xff] }
0x1210   :  { %2846 = vmatprep.mubr.msk.f32.mxu1 %vm1039_vm8, %v2062_v49  ;;  %v3029_v52 = vpack.c.bf16 %v2403_v43, %v2402_v48  ;;  %v2404_v49 = vld [vmem:[%s4244_s11 + $0x50] sm:$0xff] }
0x1212   :  { %v2051_v55 = vpop.permute.xlu1 %2050 }
0x1213   :  { %v2063_v42 = vsel %vm383_vm11, %v2051_v55, %v2059_v54  ;;  %v2405_v54 = vld [vmem:[%s4244_s11 + $0x58] sm:$0xff] }
0x1214   :  { %2847 = vmatmul.mubr.msk.f32.vlgmr.msra.gmra.mrb[34].mxu1 %vm1039_vm8, %v2063_v42  ;;  %v3032_v55 = vpack.c.bf16 %v2405_v54, %v2404_v49  ;;  %v2406_v42 = vld [vmem:[%s4244_s11 + $0x60] sm:$0xff] }
0x1215   :  { %3011 = vmatpush3.bf16.msra.mxu1 %v3008_v47  ;;  %v3035_v4 = vpack.c.bf16 %v2407_v33, %v2406_v42 }
0x1216   :  { %3012 = vmatprep.subr.bf16.mxu1 %v3322_v62 }
0x12e7   :  { %v2848_v53 = vpop.f32.mrb[34].mxu1 }
0x12e8   :  { %v2142_v27 = vadd.f32 %v2848_v53, %v1241_v8  ;;  %v2136_v5 = vpop.f32.mrb[35].mxu1 }
0x12e9   :  { %v2137_v45 = vadd.f32 %v2136_v5, %v1241_v8 }
0x12ea   :  { %v2146_v44 = vsub.f32 0.0, %v2142_v27 }
0x12eb   :  { %v2145_v14 = vsub.f32 0.0, %v2137_v45 }
0x12ec   :  { %v2149_v56 = vmul.f32 1.442695, %v2146_v44 }
0x12ed   :  { %v2147_v30 = vmul.f32 1.442695, %v2145_v14 }
0x12ee   :  { %3225 = vpow2.f32 %v2149_v56 }
0x12ef   :  { %3227 = vpow2.f32 %v2147_v30 }
0x12f8   :  { %v3226_v34 = vpop.eup %3225 }
0x12f9   :  { %v3228_v36 = vpop.eup %3227  ;;  %v2152_v58 = vadd.f32 1.0, %v3226_v34  ;;  %v2408_v34 = vld [vmem:[%s4244_s11 + $0x70] sm:$0xff] }
0x12fa   :  { %v2151_v23 = vadd.f32 1.0, %v3228_v36  ;;  %v2409_v36 = vld [vmem:[%s4244_s11 + $0x78] sm:$0xff] }
0x12fb   :  { %3229 = vrcp.f32 %v2152_v58  ;;  %v3038_v58 = vpack.c.bf16 %v2409_v36, %v2408_v34 }
0x12fc   :  { %3231 = vrcp.f32 %v2151_v23  ;;  %v2311_v23 = vld [vmem:[%s4245_s12 + $0x22] ss:$0 sm:$0xff] }
0x1305   :  { %v3230_v37 = vpop.eup %3229 }
0x1306   :  { %v3232_v22 = vpop.eup %3231  ;;  %v2156_v6 = vmul.f32 %v3230_v37, %v2142_v27 }
0x1307   :  { %v2155_v11 = vmul.f32 %v3232_v22, %v2137_v45 }
0x1309   :  { %2853 = vmatprep.mubr.msk.f32.mxu1 %vm203_vm4, %v2155_v11 }
0x130a   :  { %2854 = vmatmul.mubr.msk.f32.vlgmr.msra.gmra.mrb[36].mxu1 %vm203_vm4, %v2156_v6 }
0x130b   :  { %2866 = vmatprep.mubr.msk.f32.mxu1 %vm3321_vm3, %v3316_v17 }
0x13dd   :  { %v2855_v59 = vpop.f32.mrb[36].mxu1 }
0x13de   :  { %2242 = vrot.lane.b32.xlu0 %v2855_v59, %s3320_s22  ;;  %v2229_v38 = vpop.f32.mrb[37].mxu1  ;;  %v2312_v59 = vld [vmem:[%s4245_s12 + $0x23] ss:$0 sm:$0xff] }
0x13df   :  { %2240 = vrot.lane.b32.xlu1 %v2229_v38, %s3320_s22 }
0x13e3   :  { %2249 = vrot.lane.b32.xlu1 %v1242_v10, %s3320_s22 }
0x1407   :  { %97 = vadd.xlane.f32.xlu1 %v96_v1 }
0x1450   :  { %v2243_v13 = vpop.permute.xlu0 %2242 }
0x1451   :  { %v2241_v63 = vpop.permute.xlu1 %2240  ;;  %v2247_v19 = vadd.f32 %v2243_v13, %v3821_v35  ;;  %v2313_v35 = vld [vmem:[#allocation5] sm:$0xff] }
0x1452   :  { %v2246_v21 = vadd.f32 %v2241_v63, %v3818_v39  ;;  %v94_v39 = vpack.c.bf16 %v2498_v0, %v2498_v0  ;;  %v3013_v32 = vpack.c.bf16 %v2314_v31, %v2313_v35 }
0x1455   :  { %v2250_v25 = vpop.permute.xlu1 %2249 }
0x1456   :  { %v2252_v7 = vadd.f32 %v2250_v25, %v2246_v21  ;;  %v2253_v40 = vadd.f32 %v2250_v25, %v2247_v19 }
0x1458   :  { %v2254_v9 = vsel %vm322_vm9, %v1973_v2, %v2252_v7  ;;  %v2255_v15 = vsel %vm322_vm9, %v1974_v3, %v2253_v40  ;;  %vm3014_vm9 = vmpackc.low %vm2319_vm0, %vm3319_vm15 }
0x1459   :  { %v2256_v16 = vpack.c.bf16 %v2255_v15, %v2254_v9  ;;  %3015 = vmatpush3.bf16.msk.msra.mxu1 %vm3014_vm9, %v3013_v32 }
0x145b   :  { %2258 = vrot.lane.b32.xlu0 %v2256_v16, %s3318_s30 }
0x145f   :  { %2307 = vrot.lane.b32.xlu0 %v2305_v26, %s3311_s19 }
0x1494   :  { %v98_v47 = vpop.xlane.xlu1 %97 }
0x1495   :  { %v99_v8 = vmax.f32 %v98_v47, 1.0 }
0x1497   :  { %3233 = vrcp.f32 %v99_v8 }
0x14a1   :  { %v3234_v53 = vpop.eup %3233 }
0x14cd   :  { %v2259_v41 = vpop.permute.xlu0 %2258 }
0x14ce   :  { %2857 = vmatpush3.bf16.msra.mxu0 %v2259_v41 }
0x14cf   :  { %3016 = vmatprep.subr.bf16.mxu0 %v3322_v62 }
0x14d1   :  { %2859 = vmatmul.mubr.msk.bf16.vlgmr.msra.gmra.mrb[28].mxu0 %vm203_vm4, %v94_v39  ;;  %v2308_v5 = vpop.permute.xlu0 %2307  ;;  %vm2315_vm4 = vcmask 72704  }
0x14d2   :  { %2901 = vmatprep.mubr.msk.f32.mxu0 %vm3321_vm3, %v3316_v17  ;;  %v2396_v17 = vld [vmem:[%s4244_s11 + $0x10] sm:$0xff]  ;;  %3018 = vmatpush3.bf16.msra.mxu0 %v3017_v28  ;;  %s3281_s11 = scalar_lea.vmem %s2488_s7, 32 }
0x14d3   :  { %v3020_v51 = vpack.c.bf16 %v2397_v20, %v2396_v17  ;;  %3019 = vmatprep.subr.bf16.mxu0 %v3322_v62  ;;  %p3282_p2 = scmp.ne.s32.totalorder %s2488_s7, %s3281_s11  ;;  %p3287_p4 = scmp.lt.s32.totalorder %s3281_s11, %s3281_s11 }
0x14d5   :  { %p3288_p5 = por %p3287_p4, %p3286_p3 }
0x14d6   :  { %3021 = vmatpush3.bf16.msra.mxu0 %v3020_v51 }
0x14d7   :  { %3022 = vmatprep.subr.bf16.mxu0 %v3322_v62  ;;  %p3289_p6 = pnand %p3288_p5, %p3282_p2 }
0x14da   :  { %3024 = vmatpush3.bf16.msra.mxu0 %v3023_v46 }
0x14db   :  { %3025 = vmatprep.subr.bf16.mxu0 %v3322_v62 }
0x14de   :  { %3027 = vmatpush3.bf16.msra.mxu0 %v3026_v50 }
0x14df   :  { %3028 = vmatprep.subr.bf16.mxu0 %v3322_v62 }
0x14e2   :  { %3030 = vmatpush3.bf16.msra.mxu0 %v3029_v52 }
0x14e3   :  { %3031 = vmatprep.subr.bf16.mxu0 %v3322_v62 }
0x14e6   :  { %3033 = vmatpush3.bf16.msra.mxu0 %v3032_v55 }
0x14e7   :  { %3034 = vmatprep.subr.bf16.mxu0 %v3322_v62 }
0x14ea   :  { %3036 = vmatpush3.bf16.msra.mxu0 %v3035_v4 }
0x14eb   :  { %3037 = vmatprep.subr.bf16.mxu0 %v3322_v62 }
0x14ee   :  { %3039 = vmatpush3.bf16.msra.mxu0 %v3038_v58 }
0x15a4   :  { %v2298_v27 = vpop.f32.mrb[28].mxu0 }
0x15a5   :  { %v2304_v45 = vmul.f32 %v3234_v53, %v2298_v27  ;;  %v2860_v44 = vpop.f32.mrb[29].mxu0 }
0x15a6   :  { %v2301_v14 = vpop.f32.mrb[30].mxu0 }
0x15a7   :  { %v2861_v56 = vpop.f32.mrb[31].mxu0  ;;  %v2310_v30 = vsel %vm383_vm11, %v2304_v45, %v2308_v5 }
0x15a8   :  { %2867 = vmatmul.mubr.msk.f32.vlgmr.msra.gmra.mrb[38].mxu1 %vm2315_vm4, %v2310_v30 }
0x167b   :  { %v2389_v37 = vpop.f32.mrb[38].mxu1 }
0x167c   :  { %v2390_v22 = vadd.f32 %v2389_v37, %v2311_v23  ;;  %v2868_v11 = vpop.f32.mrb[39].mxu1 }
0x167e   :  { %v2393_v6 = vmax.f32 %v2390_v22, 0.0 }
0x1680   :  { %2902 = vmatmul.mubr.f32.vlgmr.msra.gmra.mrb[22].mxu0 %v2393_v6 }
0x1753   :  { %v2476_v38 = vpop.f32.mrb[22].mxu0 }
0x1754   :  { %v2477_v10 = vadd.f32 %v2476_v38, %v2312_v59  ;;  %v2903_v12 = vpop.f32.mrb[23].mxu0 }
0x1756   :  { %2480 = vst [vmem:[#allocation7] sm:$0x3] %v2477_v10 }
0x1757   :  { %3292 = shalt.err (!%p3289_p6)
}
0x1758   :  { %s3293_s20 = scalar_lea.hbm %s4246_s13, 32 }
0x1759   :  { %p3294_p7 = scmp.ne.s32.totalorder %s4246_s13, %s3293_s20  ;;  %p3297_p8 = scmp.lt.u32.totalorder %s3293_s20, %s4246_s13 }
0x175b   :  { %p3299_p9 = pnand %p3297_p8, %p3294_p7 }
0x175d   :  { %3302 = shalt.err (!%p3299_p9)
}
0x175e   :  { %2490 = dma.vmem_to_hbm [thread:$0]  %s2488_s7, 32, %s4246_s13, [#allocation4]  }
0x175f   :  { %3307 = dma.done.wait [#allocation4], 32  }
0x1760   :  { %3308 = vsyncadd [#allocation4], 4294967264 }
0x1761   :  { %2494 = vsyncpa [#allocation3], 1 }
0x1762   :  { %2495 = vsyncpa [#allocation6], 1 }
0x1763   :  { %2496 = vsyncpa [#allocation4], 1 }

</bundles_post_ra>
